<compile_context>
chip_gen: v7x
topology: tpu7x:2x2x1
jax: 0.10.0
libtpu: 0.0.40
codegen_flags: <defaults>
</compile_context>

<pallas_src>
import jax
import jax.numpy as jnp
from jax import lax
from jax.experimental import pallas as pl
from jax.experimental.pallas import tpu as pltpu  # noqa: F401  (kept for parity with template)

# ----------------- tiny synthetic BERT config -----------------
VOCAB = 128
TYPE_VOCAB = 2
MAX_POS = 64
HIDDEN = 32
NUM_LAYERS = 2
NUM_HEADS = 2
HEAD_DIM = HIDDEN // NUM_HEADS
INTERMEDIATE = 64
NUM_CLASSES = 3
LN_EPS = 1e-12
LANE = 128  # lane-dense output padding


# ----------------- in-kernel helpers (pure value math, f32) -----------------
def _layernorm(x, g, b):
    mu = jnp.mean(x, axis=-1, keepdims=True)
    var = jnp.mean(jnp.square(x - mu), axis=-1, keepdims=True)
    return (x - mu) * lax.rsqrt(var + LN_EPS) * g + b


def _gelu(x):
    # TODO(synk): HF BERT uses exact erf-GELU; tanh approximation used here.
    return 0.5 * x * (1.0 + jnp.tanh(0.7978845608028654 * (x + 0.044715 * x * x * x)))


# ----------------- single fused kernel: whole forward for the whole batch -----------------
def _bert_fused_kernel(
    ids_ref, tids_ref, mask_ref,                                   # inputs
    word_ref, pos_ref, type_ref, embg_ref, embb_ref,               # embedding params
    qkvw_ref, qkvb_ref, ow_ref, ob_ref, ln1g_ref, ln1b_ref,        # per-layer (stacked)
    iw_ref, ib_ref, fw_ref, fb_ref, ln2g_ref, ln2b_ref,            # per-layer (stacked)
    poolw_ref, poolb_ref, clsw_ref, clsb_ref,                      # head params (cls padded to 128 lanes)
    out_ref,                                                       # (B, 128) lane-dense logits
):
    B = mask_ref.shape[0]
    S = mask_ref.shape[2]
    BS = B * S
    bf = jnp.bfloat16

    ids = ids_ref[...]      # (B*S, 1) int32
    tids = tids_ref[...]    # (B*S, 1) int32
    mask = mask_ref[...]    # (B, 1, S) additive f32 mask over keys

    # --- embeddings: one-hot matmul gathers (word + token-type), broadcast positions ---
    iota_v = lax.broadcasted_iota(jnp.int32, (BS, VOCAB), 1)
    onehot_w = (ids == iota_v).astype(bf)                                     # (B*S, VOCAB)
    onehot_t = (tids == iota_v).astype(bf)                                    # type table padded to VOCAB rows
    we = jnp.dot(onehot_w, word_ref[...], preferred_element_type=jnp.float32)  # (B*S, H)
    te = jnp.dot(onehot_t, type_ref[...], preferred_element_type=jnp.float32)  # (B*S, H)
    emb = (we + te).reshape(B, S, HIDDEN) + pos_ref[0:S, :][None, :, :]
    x = _layernorm(emb, embg_ref[...], embb_ref[...]).reshape(BS, HIDDEN)      # (B*S, H) f32

    scale = 1.0 / (float(HEAD_DIM) ** 0.5)
    num_layers = qkvw_ref.shape[0]
    for l in range(num_layers):
        # fused QKV projection for ALL tokens of ALL sequences -> (B*S, 3H)
        qkv = jnp.dot(x.astype(bf), qkvw_ref[l],
                      preferred_element_type=jnp.float32) + qkvb_ref[l]
        qkv3 = qkv.reshape(B, S, 3 * HIDDEN)       # free leading split (sublane-tile aligned)

        # attention, batched over sequences; heads handled without any lane concat:
        # out-projection is accumulated per head (Wo pre-split per head in the wrapper).
        attn = None
        for hd in range(NUM_HEADS):
            q = qkv3[:, :, 0 * HIDDEN + hd * HEAD_DIM: 0 * HIDDEN + (hd + 1) * HEAD_DIM]
            k = qkv3[:, :, 1 * HIDDEN + hd * HEAD_DIM: 1 * HIDDEN + (hd + 1) * HEAD_DIM]
            v = qkv3[:, :, 2 * HIDDEN + hd * HEAD_DIM: 2 * HIDDEN + (hd + 1) * HEAD_DIM]
            s = jnp.einsum("bqd,bkd->bqk", q.astype(bf), k.astype(bf),
                           preferred_element_type=jnp.float32) * scale
            s = s + mask
            s = s - jnp.max(s, axis=-1, keepdims=True)
            p = jnp.exp(s)
            p = p * pl.reciprocal(jnp.sum(p, axis=-1, keepdims=True), approx=True)  # EUP vrcp
            ctx = jnp.einsum("bqk,bkd->bqd", p.astype(bf), v.astype(bf),
                             preferred_element_type=jnp.float32)                    # (B, S, D)
            ho = jnp.dot(ctx.reshape(BS, HEAD_DIM).astype(bf), ow_ref[l, hd],
                         preferred_element_type=jnp.float32)                        # (B*S, H)
            attn = ho if attn is None else attn + ho
        attn = attn + ob_ref[l]
        x = _layernorm(attn + x, ln1g_ref[l], ln1b_ref[l])

        # FFN (GELU), f32 elementwise, bf16 matmul operands
        ffn = jnp.dot(x.astype(bf), iw_ref[l], preferred_element_type=jnp.float32) + ib_ref[l]
        ffn = _gelu(ffn)
        ffn = jnp.dot(ffn.astype(bf), fw_ref[l], preferred_element_type=jnp.float32) + fb_ref[l]
        x = _layernorm(ffn + x, ln2g_ref[l], ln2b_ref[l])

    # --- pooler (tanh on each sequence's CLS token) + classifier; dropout = identity ---
    cls = jnp.concatenate([x[b * S: b * S + 1, :] for b in range(B)], axis=0)       # (B, H)
    pooled = jnp.tanh(jnp.dot(cls.astype(bf), poolw_ref[...],
                              preferred_element_type=jnp.float32) + poolb_ref[...])  # (B, H)
    logits = jnp.dot(pooled.astype(bf), clsw_ref[...],
                     preferred_element_type=jnp.float32) + clsb_ref[...]             # (B, 128) lane-dense
    out_ref[...] = logits.astype(out_ref.dtype)


# ----------------- forward pass (mirrors BertClassifier.forward) -----------------
def bert_classifier_forward(params, input_ids, attention_mask, token_type_ids=None):
    B, S = input_ids.shape
    assert S <= MAX_POS, "sequence length exceeds max position embeddings"
    assert TYPE_VOCAB <= VOCAB
    if token_type_ids is None:
        token_type_ids = jnp.zeros_like(input_ids)

    ids = input_ids.astype(jnp.int32).reshape(B * S, 1)
    tids = token_type_ids.astype(jnp.int32).reshape(B * S, 1)
    mask_add = ((1.0 - attention_mask.astype(jnp.float32)) * -1e4).reshape(B, 1, S)

    bf = jnp.bfloat16
    layers = params["layers"]
    # Stack per-layer params (leading layer dim, statically indexed in-kernel).
    # Weights feeding matmuls are stored bf16; biases / LN params / pos table stay f32.
    qkv_w = jnp.stack([jnp.concatenate([lp["q_w"], lp["k_w"], lp["v_w"]], axis=1)
                       for lp in layers]).astype(bf)                                  # (L, H, 3H)
    qkv_b = jnp.stack([jnp.concatenate([lp["q_b"], lp["k_b"], lp["v_b"]])[None, :]
                       for lp in layers])                                             # (L, 1, 3H)
    # out-proj weight split per head -> (L, NH, D, H): head outputs are accumulated
    # in-kernel instead of lane-concatenated.
    o_w = jnp.stack([lp["o_w"].reshape(NUM_HEADS, HEAD_DIM, HIDDEN)
                     for lp in layers]).astype(bf)                                    # (L, NH, D, H)
    o_b = jnp.stack([lp["o_b"][None, :] for lp in layers])
    ln1_g = jnp.stack([lp["ln1_g"][None, :] for lp in layers])
    ln1_b = jnp.stack([lp["ln1_b"][None, :] for lp in layers])
    i_w = jnp.stack([lp["i_w"] for lp in layers]).astype(bf)
    i_b = jnp.stack([lp["i_b"][None, :] for lp in layers])
    f_w = jnp.stack([lp["f_w"] for lp in layers]).astype(bf)
    f_b = jnp.stack([lp["f_b"][None, :] for lp in layers])
    ln2_g = jnp.stack([lp["ln2_g"][None, :] for lp in layers])
    ln2_b = jnp.stack([lp["ln2_b"][None, :] for lp in layers])

    # token-type table zero-padded to VOCAB rows -> general one-hot gather in-kernel.
    type_pad = jnp.zeros((VOCAB, HIDDEN), jnp.float32).at[:TYPE_VOCAB].set(params["type_emb"])
    # classifier padded to 128 output lanes -> lane-dense final store.
    cls_w_pad = jnp.zeros((HIDDEN, LANE), jnp.float32).at[:, :NUM_CLASSES].set(params["cls_w"])
    cls_b_pad = jnp.zeros((1, LANE), jnp.float32).at[:, :NUM_CLASSES].set(params["cls_b"])

    param_arrays = [
        params["word_emb"].astype(bf), params["pos_emb"], type_pad.astype(bf),
        params["emb_ln_g"][None, :], params["emb_ln_b"][None, :],
        qkv_w, qkv_b, o_w, o_b, ln1_g, ln1_b, i_w, i_b, f_w, f_b, ln2_g, ln2_b,
        params["pool_w"].astype(bf), params["pool_b"][None, :],
        cls_w_pad.astype(bf), cls_b_pad,
    ]

    # Single invocation, no grid: everything (inputs + ~70 KB of params) is VMEM-resident,
    # fetched exactly once; no per-step pipeline overhead or param double-buffering.
    out = pl.pallas_call(
        _bert_fused_kernel,
        out_shape=jax.ShapeDtypeStruct((B, LANE), jnp.float32),
    )(ids, tids, mask_add, *param_arrays)
    return out[:, :NUM_CLASSES]


# ----------------- parameters (deterministic synthetic init) -----------------
def init_params(key):
    keys = iter(jax.random.split(key, 32))

    def nrm(shape):
        return 0.02 * jax.random.normal(next(keys), shape, jnp.float32)

    params = {
        "word_emb": nrm((VOCAB, HIDDEN)),
        "pos_emb": nrm((MAX_POS, HIDDEN)),
        "type_emb": nrm((TYPE_VOCAB, HIDDEN)),
        "emb_ln_g": jnp.ones((HIDDEN,), jnp.float32),
        "emb_ln_b": jnp.zeros((HIDDEN,), jnp.float32),
        "layers": [],
        "pool_w": nrm((HIDDEN, HIDDEN)),
        "pool_b": jnp.zeros((HIDDEN,), jnp.float32),
        "cls_w": nrm((HIDDEN, NUM_CLASSES)),
        "cls_b": jnp.zeros((NUM_CLASSES,), jnp.float32),
    }
    for _ in range(NUM_LAYERS):
        params["layers"].append(
            {
                "q_w": nrm((HIDDEN, HIDDEN)), "q_b": jnp.zeros((HIDDEN,), jnp.float32),
                "k_w": nrm((HIDDEN, HIDDEN)), "k_b": jnp.zeros((HIDDEN,), jnp.float32),
                "v_w": nrm((HIDDEN, HIDDEN)), "v_b": jnp.zeros((HIDDEN,), jnp.float32),
                "o_w": nrm((HIDDEN, HIDDEN)), "o_b": jnp.zeros((HIDDEN,), jnp.float32),
                "ln1_g": jnp.ones((HIDDEN,), jnp.float32),
                "ln1_b": jnp.zeros((HIDDEN,), jnp.float32),
                "i_w": nrm((HIDDEN, INTERMEDIATE)),
                "i_b": jnp.zeros((INTERMEDIATE,), jnp.float32),
                "f_w": nrm((INTERMEDIATE, HIDDEN)),
                "f_b": jnp.zeros((HIDDEN,), jnp.float32),
                "ln2_g": jnp.ones((HIDDEN,), jnp.float32),
                "ln2_b": jnp.zeros((HIDDEN,), jnp.float32),
            }
        )
    return params


# ----------------- main -----------------
if __name__ == "__main__":
    key = jax.random.PRNGKey(0)
    pkey, ikey = jax.random.split(key)

    params = init_params(pkey)

    B, S = 2, 8
    input_ids = jax.random.randint(ikey, (B, S), 0, VOCAB, dtype=jnp.int32)
    attention_mask = jnp.array(
        [[1, 1, 1, 1, 1, 1, 1, 1],
         [1, 1, 1, 1, 1, 1, 0, 0]], dtype=jnp.int32
    )

    fwd = jax.jit(bert_classifier_forward)
    logits = fwd(params, input_ids, attention_mask)
    jax.block_until_ready(logits)

    assert logits.shape == (B, NUM_CLASSES)
    assert bool(jnp.all(jnp.isfinite(logits)))
    print("KERNEL_OK")
</pallas_src>

<mosaic_0001>
module attributes {stable_mosaic.version = 11 : i64} {
  func.func @_bert_fused_kernel(%arg0: memref<16x1xi32, #tpu.memory_space<vmem>>, %arg1: memref<16x1xi32, #tpu.memory_space<vmem>>, %arg2: memref<2x1x8xf32, #tpu.memory_space<vmem>>, %arg3: memref<128x32xbf16, #tpu.memory_space<vmem>>, %arg4: memref<64x32xf32, #tpu.memory_space<vmem>>, %arg5: memref<128x32xbf16, #tpu.memory_space<vmem>>, %arg6: memref<1x32xf32, #tpu.memory_space<vmem>>, %arg7: memref<1x32xf32, #tpu.memory_space<vmem>>, %arg8: memref<2x32x96xbf16, #tpu.memory_space<vmem>>, %arg9: memref<2x1x96xf32, #tpu.memory_space<vmem>>, %arg10: memref<2x2x16x32xbf16, #tpu.memory_space<vmem>>, %arg11: memref<2x1x32xf32, #tpu.memory_space<vmem>>, %arg12: memref<2x1x32xf32, #tpu.memory_space<vmem>>, %arg13: memref<2x1x32xf32, #tpu.memory_space<vmem>>, %arg14: memref<2x32x64xbf16, #tpu.memory_space<vmem>>, %arg15: memref<2x1x64xf32, #tpu.memory_space<vmem>>, %arg16: memref<2x64x32xbf16, #tpu.memory_space<vmem>>, %arg17: memref<2x1x32xf32, #tpu.memory_space<vmem>>, %arg18: memref<2x1x32xf32, #tpu.memory_space<vmem>>, %arg19: memref<2x1x32xf32, #tpu.memory_space<vmem>>, %arg20: memref<32x32xbf16, #tpu.memory_space<vmem>>, %arg21: memref<1x32xf32, #tpu.memory_space<vmem>>, %arg22: memref<32x128xbf16, #tpu.memory_space<vmem>>, %arg23: memref<1x128xf32, #tpu.memory_space<vmem>>, %arg24: memref<2x128xf32, #tpu.memory_space<vmem>>) attributes {dimension_semantics = [], scalar_prefetch = 0 : i64, scratch_operands = 0 : i64, tpu.core_type = #tpu.core_type<tc>} {
    %c0 = arith.constant 0 : index
    %c0_0 = arith.constant 0 : index
    %0 = vector.load %arg0[%c0, %c0_0] : memref<16x1xi32, #tpu.memory_space<vmem>>, vector<16x1xi32>
    %c0_1 = arith.constant 0 : index
    %c0_2 = arith.constant 0 : index
    %1 = vector.load %arg1[%c0_1, %c0_2] : memref<16x1xi32, #tpu.memory_space<vmem>>, vector<16x1xi32>
    %c0_3 = arith.constant 0 : index
    %c0_4 = arith.constant 0 : index
    %c0_5 = arith.constant 0 : index
    %2 = vector.load %arg2[%c0_3, %c0_4, %c0_5] : memref<2x1x8xf32, #tpu.memory_space<vmem>>, vector<2x1x8xf32>
    %3 = tpu.iota {dimensions = array<i32: 1>} : vector<16x128xi32>
    %4 = vector.broadcast %0 : vector<16x1xi32> to vector<16x128xi32>
    %5 = arith.cmpi eq, %4, %3 : vector<16x128xi32>
    %6 = arith.extui %5 : vector<16x128xi1> to vector<16x128xi32>
    %7 = arith.sitofp %6 : vector<16x128xi32> to vector<16x128xf32>
    %8 = arith.truncf %7 : vector<16x128xf32> to vector<16x128xbf16>
    %9 = vector.broadcast %1 : vector<16x1xi32> to vector<16x128xi32>
    %10 = arith.cmpi eq, %9, %3 : vector<16x128xi32>
    %11 = arith.extui %10 : vector<16x128xi1> to vector<16x128xi32>
    %12 = arith.sitofp %11 : vector<16x128xi32> to vector<16x128xf32>
    %13 = arith.truncf %12 : vector<16x128xf32> to vector<16x128xbf16>
    %c0_6 = arith.constant 0 : index
    %c0_7 = arith.constant 0 : index
    %14 = vector.load %arg3[%c0_6, %c0_7] : memref<128x32xbf16, #tpu.memory_space<vmem>>, vector<128x32xbf16>
    %cst = arith.constant dense<0.000000e+00> : vector<16x32xf32>
    %15 = tpu.matmul %8, %14, %cst {dimension_numbers = #tpu.dot_dimension_numbers<[1], [0], [0], [1], [0, 0, 1, 1], [], []>} : vector<16x128xbf16>, vector<128x32xbf16>, vector<16x32xf32> -> vector<16x32xf32>
    %c0_8 = arith.constant 0 : index
    %c0_9 = arith.constant 0 : index
    %16 = vector.load %arg5[%c0_8, %c0_9] : memref<128x32xbf16, #tpu.memory_space<vmem>>, vector<128x32xbf16>
    %cst_10 = arith.constant dense<0.000000e+00> : vector<16x32xf32>
    %17 = tpu.matmul %13, %16, %cst_10 {dimension_numbers = #tpu.dot_dimension_numbers<[1], [0], [0], [1], [0, 0, 1, 1], [], []>} : vector<16x128xbf16>, vector<128x32xbf16>, vector<16x32xf32> -> vector<16x32xf32>
    %18 = arith.addf %15, %17 : vector<16x32xf32>
    %19 = vector.shape_cast %18 : vector<16x32xf32> to vector<2x8x32xf32>
    %c0_11 = arith.constant 0 : index
    %c0_12 = arith.constant 0 : index
    %20 = vector.load %arg4[%c0_11, %c0_12] : memref<64x32xf32, #tpu.memory_space<vmem>>, vector<8x32xf32>
    %21 = vector.shape_cast %20 : vector<8x32xf32> to vector<1x8x32xf32>
    %22 = vector.broadcast %21 : vector<1x8x32xf32> to vector<2x8x32xf32>
    %23 = arith.addf %19, %22 : vector<2x8x32xf32>
    %c0_13 = arith.constant 0 : index
    %c0_14 = arith.constant 0 : index
    %24 = vector.load %arg6[%c0_13, %c0_14] : memref<1x32xf32, #tpu.memory_space<vmem>>, vector<1x32xf32>
    %c0_15 = arith.constant 0 : index
    %c0_16 = arith.constant 0 : index
    %25 = vector.load %arg7[%c0_15, %c0_16] : memref<1x32xf32, #tpu.memory_space<vmem>>, vector<1x32xf32>
    %cst_17 = arith.constant dense<0.000000e+00> : vector<2x8xf32>
    %26 = vector.multi_reduction <add>, %23, %cst_17 [2] : vector<2x8x32xf32> to vector<2x8xf32>
    %27 = vector.shape_cast %26 : vector<2x8xf32> to vector<2x8x1xf32>
    %cst_18 = arith.constant 3.200000e+01 : f32
    %28 = vector.broadcast %cst_18 : f32 to vector<2x8x1xf32>
    %29 = arith.divf %27, %28 : vector<2x8x1xf32>
    %30 = vector.broadcast %29 : vector<2x8x1xf32> to vector<2x8x32xf32>
    %31 = arith.subf %23, %30 : vector<2x8x32xf32>
    %32 = arith.mulf %31, %31 : vector<2x8x32xf32>
    %cst_19 = arith.constant dense<0.000000e+00> : vector<2x8xf32>
    %33 = vector.multi_reduction <add>, %32, %cst_19 [2] : vector<2x8x32xf32> to vector<2x8xf32>
    %34 = vector.shape_cast %33 : vector<2x8xf32> to vector<2x8x1xf32>
    %cst_20 = arith.constant 3.200000e+01 : f32
    %35 = vector.broadcast %cst_20 : f32 to vector<2x8x1xf32>
    %36 = arith.divf %34, %35 : vector<2x8x1xf32>
    %37 = vector.broadcast %29 : vector<2x8x1xf32> to vector<2x8x32xf32>
    %38 = arith.subf %23, %37 : vector<2x8x32xf32>
    %cst_21 = arith.constant 9.99999996E-13 : f32
    %39 = vector.broadcast %cst_21 : f32 to vector<2x8x1xf32>
    %40 = arith.addf %36, %39 : vector<2x8x1xf32>
    %41 = math.rsqrt %40 : vector<2x8x1xf32>
    %42 = vector.broadcast %41 : vector<2x8x1xf32> to vector<2x8x32xf32>
    %43 = arith.mulf %38, %42 : vector<2x8x32xf32>
    %44 = vector.shape_cast %24 : vector<1x32xf32> to vector<1x1x32xf32>
    %45 = vector.broadcast %44 : vector<1x1x32xf32> to vector<2x8x32xf32>
    %46 = arith.mulf %43, %45 : vector<2x8x32xf32>
    %47 = vector.shape_cast %25 : vector<1x32xf32> to vector<1x1x32xf32>
    %48 = vector.broadcast %47 : vector<1x1x32xf32> to vector<2x8x32xf32>
    %49 = arith.addf %46, %48 : vector<2x8x32xf32>
    %50 = vector.shape_cast %49 : vector<2x8x32xf32> to vector<16x32xf32>
    %51 = arith.truncf %50 : vector<16x32xf32> to vector<16x32xbf16>
    %c0_22 = arith.constant 0 : index
    %c0_23 = arith.constant 0 : index
    %c0_24 = arith.constant 0 : index
    %52 = vector.load %arg8[%c0_22, %c0_23, %c0_24] : memref<2x32x96xbf16, #tpu.memory_space<vmem>>, vector<1x32x96xbf16>
    %53 = vector.shape_cast %52 : vector<1x32x96xbf16> to vector<32x96xbf16>
    %cst_25 = arith.constant dense<0.000000e+00> : vector<16x96xf32>
    %54 = tpu.matmul %51, %53, %cst_25 {dimension_numbers = #tpu.dot_dimension_numbers<[1], [0], [0], [1], [0, 0, 1, 1], [], []>} : vector<16x32xbf16>, vector<32x96xbf16>, vector<16x96xf32> -> vector<16x96xf32>
    %c0_26 = arith.constant 0 : index
    %c0_27 = arith.constant 0 : index
    %c0_28 = arith.constant 0 : index
    %55 = vector.load %arg9[%c0_26, %c0_27, %c0_28] : memref<2x1x96xf32, #tpu.memory_space<vmem>>, vector<1x1x96xf32>
    %56 = vector.shape_cast %55 : vector<1x1x96xf32> to vector<1x96xf32>
    %57 = vector.broadcast %56 : vector<1x96xf32> to vector<16x96xf32>
    %58 = arith.addf %54, %57 : vector<16x96xf32>
    %59 = vector.shape_cast %58 : vector<16x96xf32> to vector<2x8x96xf32>
    %60 = vector.extract_strided_slice %59 {offsets = [0, 0, 0], sizes = [2, 8, 16], strides = [1, 1, 1]} : vector<2x8x96xf32> to vector<2x8x16xf32>
    %61 = vector.extract_strided_slice %59 {offsets = [0, 0, 32], sizes = [2, 8, 16], strides = [1, 1, 1]} : vector<2x8x96xf32> to vector<2x8x16xf32>
    %62 = vector.extract_strided_slice %59 {offsets = [0, 0, 64], sizes = [2, 8, 16], strides = [1, 1, 1]} : vector<2x8x96xf32> to vector<2x8x16xf32>
    %63 = arith.truncf %60 : vector<2x8x16xf32> to vector<2x8x16xbf16>
    %64 = arith.truncf %61 : vector<2x8x16xf32> to vector<2x8x16xbf16>
    "tpu.trace_start"() <{level = 10 : i32, message = "bqd,bkd->bqk"}> : () -> ()
    %cst_29 = arith.constant dense<0.000000e+00> : vector<2x8x8xf32>
    %65 = tpu.matmul %63, %64, %cst_29 {dimension_numbers = #tpu.dot_dimension_numbers<[2], [2], [1], [1], [0, 0, 0, 1, 1, 1], [0], [0]>} : vector<2x8x16xbf16>, vector<2x8x16xbf16>, vector<2x8x8xf32> -> vector<2x8x8xf32>
    "tpu.trace_stop"() : () -> ()
    %cst_30 = arith.constant 2.500000e-01 : f32
    %66 = vector.broadcast %cst_30 : f32 to vector<2x8x8xf32>
    %67 = arith.mulf %65, %66 : vector<2x8x8xf32>
    %68 = vector.broadcast %2 : vector<2x1x8xf32> to vector<2x8x8xf32>
    %69 = arith.addf %67, %68 : vector<2x8x8xf32>
    %cst_31 = arith.constant dense<0xFF800000> : vector<2x8xf32>
    %70 = vector.multi_reduction <maximumf>, %69, %cst_31 [2] : vector<2x8x8xf32> to vector<2x8xf32>
    %71 = vector.shape_cast %70 : vector<2x8xf32> to vector<2x8x1xf32>
    %72 = vector.broadcast %71 : vector<2x8x1xf32> to vector<2x8x8xf32>
    %73 = arith.subf %69, %72 : vector<2x8x8xf32>
    %74 = math.exp %73 : vector<2x8x8xf32>
    %cst_32 = arith.constant dense<0.000000e+00> : vector<2x8xf32>
    %75 = vector.multi_reduction <add>, %74, %cst_32 [2] : vector<2x8x8xf32> to vector<2x8xf32>
    %76 = vector.shape_cast %75 : vector<2x8xf32> to vector<2x8x1xf32>
    %77 = tpu.reciprocal %76 {approx = true} : vector<2x8x1xf32> -> vector<2x8x1xf32>
    %78 = vector.broadcast %77 : vector<2x8x1xf32> to vector<2x8x8xf32>
    %79 = arith.mulf %74, %78 : vector<2x8x8xf32>
    %80 = arith.truncf %79 : vector<2x8x8xf32> to vector<2x8x8xbf16>
    %81 = arith.truncf %62 : vector<2x8x16xf32> to vector<2x8x16xbf16>
    "tpu.trace_start"() <{level = 10 : i32, message = "bqk,bkd->bqd"}> : () -> ()
    %cst_33 = arith.constant dense<0.000000e+00> : vector<2x8x16xf32>
    %82 = tpu.matmul %80, %81, %cst_33 {dimension_numbers = #tpu.dot_dimension_numbers<[2], [1], [1], [2], [0, 0, 0, 1, 1, 2], [0], [0]>} : vector<2x8x8xbf16>, vector<2x8x16xbf16>, vector<2x8x16xf32> -> vector<2x8x16xf32>
    "tpu.trace_stop"() : () -> ()
    %83 = vector.shape_cast %82 : vector<2x8x16xf32> to vector<16x16xf32>
    %84 = arith.truncf %83 : vector<16x16xf32> to vector<16x16xbf16>
    %c0_34 = arith.constant 0 : index
    %c0_35 = arith.constant 0 : index
    %c0_36 = arith.constant 0 : index
    %c0_37 = arith.constant 0 : index
    %85 = vector.load %arg10[%c0_34, %c0_35, %c0_36, %c0_37] : memref<2x2x16x32xbf16, #tpu.memory_space<vmem>>, vector<1x1x16x32xbf16>
    %86 = vector.shape_cast %85 : vector<1x1x16x32xbf16> to vector<16x32xbf16>
    %cst_38 = arith.constant dense<0.000000e+00> : vector<16x32xf32>
    %87 = tpu.matmul %84, %86, %cst_38 {dimension_numbers = #tpu.dot_dimension_numbers<[1], [0], [0], [1], [0, 0, 1, 1], [], []>} : vector<16x16xbf16>, vector<16x32xbf16>, vector<16x32xf32> -> vector<16x32xf32>
    %88 = vector.extract_strided_slice %59 {offsets = [0, 0, 16], sizes = [2, 8, 16], strides = [1, 1, 1]} : vector<2x8x96xf32> to vector<2x8x16xf32>
    %89 = vector.extract_strided_slice %59 {offsets = [0, 0, 48], sizes = [2, 8, 16], strides = [1, 1, 1]} : vector<2x8x96xf32> to vector<2x8x16xf32>
    %90 = vector.extract_strided_slice %59 {offsets = [0, 0, 80], sizes = [2, 8, 16], strides = [1, 1, 1]} : vector<2x8x96xf32> to vector<2x8x16xf32>
    %91 = arith.truncf %88 : vector<2x8x16xf32> to vector<2x8x16xbf16>
    %92 = arith.truncf %89 : vector<2x8x16xf32> to vector<2x8x16xbf16>
    "tpu.trace_start"() <{level = 10 : i32, message = "bqd,bkd->bqk"}> : () -> ()
    %cst_39 = arith.constant dense<0.000000e+00> : vector<2x8x8xf32>
    %93 = tpu.matmul %91, %92, %cst_39 {dimension_numbers = #tpu.dot_dimension_numbers<[2], [2], [1], [1], [0, 0, 0, 1, 1, 1], [0], [0]>} : vector<2x8x16xbf16>, vector<2x8x16xbf16>, vector<2x8x8xf32> -> vector<2x8x8xf32>
    "tpu.trace_stop"() : () -> ()
    %cst_40 = arith.constant 2.500000e-01 : f32
    %94 = vector.broadcast %cst_40 : f32 to vector<2x8x8xf32>
    %95 = arith.mulf %93, %94 : vector<2x8x8xf32>
    %96 = vector.broadcast %2 : vector<2x1x8xf32> to vector<2x8x8xf32>
    %97 = arith.addf %95, %96 : vector<2x8x8xf32>
    %cst_41 = arith.constant dense<0xFF800000> : vector<2x8xf32>
    %98 = vector.multi_reduction <maximumf>, %97, %cst_41 [2] : vector<2x8x8xf32> to vector<2x8xf32>
    %99 = vector.shape_cast %98 : vector<2x8xf32> to vector<2x8x1xf32>
    %100 = vector.broadcast %99 : vector<2x8x1xf32> to vector<2x8x8xf32>
    %101 = arith.subf %97, %100 : vector<2x8x8xf32>
    %102 = math.exp %101 : vector<2x8x8xf32>
    %cst_42 = arith.constant dense<0.000000e+00> : vector<2x8xf32>
    %103 = vector.multi_reduction <add>, %102, %cst_42 [2] : vector<2x8x8xf32> to vector<2x8xf32>
    %104 = vector.shape_cast %103 : vector<2x8xf32> to vector<2x8x1xf32>
    %105 = tpu.reciprocal %104 {approx = true} : vector<2x8x1xf32> -> vector<2x8x1xf32>
    %106 = vector.broadcast %105 : vector<2x8x1xf32> to vector<2x8x8xf32>
    %107 = arith.mulf %102, %106 : vector<2x8x8xf32>
    %108 = arith.truncf %107 : vector<2x8x8xf32> to vector<2x8x8xbf16>
    %109 = arith.truncf %90 : vector<2x8x16xf32> to vector<2x8x16xbf16>
    "tpu.trace_start"() <{level = 10 : i32, message = "bqk,bkd->bqd"}> : () -> ()
    %cst_43 = arith.constant dense<0.000000e+00> : vector<2x8x16xf32>
    %110 = tpu.matmul %108, %109, %cst_43 {dimension_numbers = #tpu.dot_dimension_numbers<[2], [1], [1], [2], [0, 0, 0, 1, 1, 2], [0], [0]>} : vector<2x8x8xbf16>, vector<2x8x16xbf16>, vector<2x8x16xf32> -> vector<2x8x16xf32>
    "tpu.trace_stop"() : () -> ()
    %111 = vector.shape_cast %110 : vector<2x8x16xf32> to vector<16x16xf32>
    %112 = arith.truncf %111 : vector<16x16xf32> to vector<16x16xbf16>
    %c0_44 = arith.constant 0 : index
    %c1 = arith.constant 1 : index
    %c0_45 = arith.constant 0 : index
    %c0_46 = arith.constant 0 : index
    %113 = vector.load %arg10[%c0_44, %c1, %c0_45, %c0_46] : memref<2x2x16x32xbf16, #tpu.memory_space<vmem>>, vector<1x1x16x32xbf16>
    %114 = vector.shape_cast %113 : vector<1x1x16x32xbf16> to vector<16x32xbf16>
    %cst_47 = arith.constant dense<0.000000e+00> : vector<16x32xf32>
    %115 = tpu.matmul %112, %114, %cst_47 {dimension_numbers = #tpu.dot_dimension_numbers<[1], [0], [0], [1], [0, 0, 1, 1], [], []>} : vector<16x16xbf16>, vector<16x32xbf16>, vector<16x32xf32> -> vector<16x32xf32>
    %116 = arith.addf %87, %115 : vector<16x32xf32>
    %c0_48 = arith.constant 0 : index
    %c0_49 = arith.constant 0 : index
    %c0_50 = arith.constant 0 : index
    %117 = vector.load %arg11[%c0_48, %c0_49, %c0_50] : memref<2x1x32xf32, #tpu.memory_space<vmem>>, vector<1x1x32xf32>
    %118 = vector.shape_cast %117 : vector<1x1x32xf32> to vector<1x32xf32>
    %119 = vector.broadcast %118 : vector<1x32xf32> to vector<16x32xf32>
    %120 = arith.addf %116, %119 : vector<16x32xf32>
    %121 = arith.addf %120, %50 : vector<16x32xf32>
    %c0_51 = arith.constant 0 : index
    %c0_52 = arith.constant 0 : index
    %c0_53 = arith.constant 0 : index
    %122 = vector.load %arg12[%c0_51, %c0_52, %c0_53] : memref<2x1x32xf32, #tpu.memory_space<vmem>>, vector<1x1x32xf32>
    %123 = vector.shape_cast %122 : vector<1x1x32xf32> to vector<1x32xf32>
    %c0_54 = arith.constant 0 : index
    %c0_55 = arith.constant 0 : index
    %c0_56 = arith.constant 0 : index
    %124 = vector.load %arg13[%c0_54, %c0_55, %c0_56] : memref<2x1x32xf32, #tpu.memory_space<vmem>>, vector<1x1x32xf32>
    %125 = vector.shape_cast %124 : vector<1x1x32xf32> to vector<1x32xf32>
    %cst_57 = arith.constant dense<0.000000e+00> : vector<16xf32>
    %126 = vector.multi_reduction <add>, %121, %cst_57 [1] : vector<16x32xf32> to vector<16xf32>
    %127 = vector.shape_cast %126 : vector<16xf32> to vector<16x1xf32>
    %cst_58 = arith.constant 3.200000e+01 : f32
    %128 = vector.broadcast %cst_58 : f32 to vector<16x1xf32>
    %129 = arith.divf %127, %128 : vector<16x1xf32>
    %130 = vector.broadcast %129 : vector<16x1xf32> to vector<16x32xf32>
    %131 = arith.subf %121, %130 : vector<16x32xf32>
    %132 = arith.mulf %131, %131 : vector<16x32xf32>
    %cst_59 = arith.constant dense<0.000000e+00> : vector<16xf32>
    %133 = vector.multi_reduction <add>, %132, %cst_59 [1] : vector<16x32xf32> to vector<16xf32>
    %134 = vector.shape_cast %133 : vector<16xf32> to vector<16x1xf32>
    %cst_60 = arith.constant 3.200000e+01 : f32
    %135 = vector.broadcast %cst_60 : f32 to vector<16x1xf32>
    %136 = arith.divf %134, %135 : vector<16x1xf32>
    %137 = vector.broadcast %129 : vector<16x1xf32> to vector<16x32xf32>
    %138 = arith.subf %121, %137 : vector<16x32xf32>
    %cst_61 = arith.constant 9.99999996E-13 : f32
    %139 = vector.broadcast %cst_61 : f32 to vector<16x1xf32>
    %140 = arith.addf %136, %139 : vector<16x1xf32>
    %141 = math.rsqrt %140 : vector<16x1xf32>
    %142 = vector.broadcast %141 : vector<16x1xf32> to vector<16x32xf32>
    %143 = arith.mulf %138, %142 : vector<16x32xf32>
    %144 = vector.broadcast %123 : vector<1x32xf32> to vector<16x32xf32>
    %145 = arith.mulf %143, %144 : vector<16x32xf32>
    %146 = vector.broadcast %125 : vector<1x32xf32> to vector<16x32xf32>
    %147 = arith.addf %145, %146 : vector<16x32xf32>
    %148 = arith.truncf %147 : vector<16x32xf32> to vector<16x32xbf16>
    %c0_62 = arith.constant 0 : index
    %c0_63 = arith.constant 0 : index
    %c0_64 = arith.constant 0 : index
    %149 = vector.load %arg14[%c0_62, %c0_63, %c0_64] : memref<2x32x64xbf16, #tpu.memory_space<vmem>>, vector<1x32x64xbf16>
    %150 = vector.shape_cast %149 : vector<1x32x64xbf16> to vector<32x64xbf16>
    %cst_65 = arith.constant dense<0.000000e+00> : vector<16x64xf32>
    %151 = tpu.matmul %148, %150, %cst_65 {dimension_numbers = #tpu.dot_dimension_numbers<[1], [0], [0], [1], [0, 0, 1, 1], [], []>} : vector<16x32xbf16>, vector<32x64xbf16>, vector<16x64xf32> -> vector<16x64xf32>
    %c0_66 = arith.constant 0 : index
    %c0_67 = arith.constant 0 : index
    %c0_68 = arith.constant 0 : index
    %152 = vector.load %arg15[%c0_66, %c0_67, %c0_68] : memref<2x1x64xf32, #tpu.memory_space<vmem>>, vector<1x1x64xf32>
    %153 = vector.shape_cast %152 : vector<1x1x64xf32> to vector<1x64xf32>
    %154 = vector.broadcast %153 : vector<1x64xf32> to vector<16x64xf32>
    %155 = arith.addf %151, %154 : vector<16x64xf32>
    %cst_69 = arith.constant 5.000000e-01 : f32
    %156 = vector.broadcast %cst_69 : f32 to vector<16x64xf32>
    %157 = arith.mulf %156, %155 : vector<16x64xf32>
    %cst_70 = arith.constant 4.471500e-02 : f32
    %158 = vector.broadcast %cst_70 : f32 to vector<16x64xf32>
    %159 = arith.mulf %158, %155 : vector<16x64xf32>
    %160 = arith.mulf %159, %155 : vector<16x64xf32>
    %161 = arith.mulf %160, %155 : vector<16x64xf32>
    %162 = arith.addf %155, %161 : vector<16x64xf32>
    %cst_71 = arith.constant 0.797884583 : f32
    %163 = vector.broadcast %cst_71 : f32 to vector<16x64xf32>
    %164 = arith.mulf %163, %162 : vector<16x64xf32>
    %165 = math.tanh %164 : vector<16x64xf32>
    %cst_72 = arith.constant 1.000000e+00 : f32
    %166 = vector.broadcast %cst_72 : f32 to vector<16x64xf32>
    %167 = arith.addf %166, %165 : vector<16x64xf32>
    %168 = arith.mulf %157, %167 : vector<16x64xf32>
    %169 = arith.truncf %168 : vector<16x64xf32> to vector<16x64xbf16>
    %c0_73 = arith.constant 0 : index
    %c0_74 = arith.constant 0 : index
    %c0_75 = arith.constant 0 : index
    %170 = vector.load %arg16[%c0_73, %c0_74, %c0_75] : memref<2x64x32xbf16, #tpu.memory_space<vmem>>, vector<1x64x32xbf16>
    %171 = vector.shape_cast %170 : vector<1x64x32xbf16> to vector<64x32xbf16>
    %cst_76 = arith.constant dense<0.000000e+00> : vector<16x32xf32>
    %172 = tpu.matmul %169, %171, %cst_76 {dimension_numbers = #tpu.dot_dimension_numbers<[1], [0], [0], [1], [0, 0, 1, 1], [], []>} : vector<16x64xbf16>, vector<64x32xbf16>, vector<16x32xf32> -> vector<16x32xf32>
    %c0_77 = arith.constant 0 : index
    %c0_78 = arith.constant 0 : index
    %c0_79 = arith.constant 0 : index
    %173 = vector.load %arg17[%c0_77, %c0_78, %c0_79] : memref<2x1x32xf32, #tpu.memory_space<vmem>>, vector<1x1x32xf32>
    %174 = vector.shape_cast %173 : vector<1x1x32xf32> to vector<1x32xf32>
    %175 = vector.broadcast %174 : vector<1x32xf32> to vector<16x32xf32>
    %176 = arith.addf %172, %175 : vector<16x32xf32>
    %177 = arith.addf %176, %147 : vector<16x32xf32>
    %c0_80 = arith.constant 0 : index
    %c0_81 = arith.constant 0 : index
    %c0_82 = arith.constant 0 : index
    %178 = vector.load %arg18[%c0_80, %c0_81, %c0_82] : memref<2x1x32xf32, #tpu.memory_space<vmem>>, vector<1x1x32xf32>
    %179 = vector.shape_cast %178 : vector<1x1x32xf32> to vector<1x32xf32>
    %c0_83 = arith.constant 0 : index
    %c0_84 = arith.constant 0 : index
    %c0_85 = arith.constant 0 : index
    %180 = vector.load %arg19[%c0_83, %c0_84, %c0_85] : memref<2x1x32xf32, #tpu.memory_space<vmem>>, vector<1x1x32xf32>
    %181 = vector.shape_cast %180 : vector<1x1x32xf32> to vector<1x32xf32>
    %cst_86 = arith.constant dense<0.000000e+00> : vector<16xf32>
    %182 = vector.multi_reduction <add>, %177, %cst_86 [1] : vector<16x32xf32> to vector<16xf32>
    %183 = vector.shape_cast %182 : vector<16xf32> to vector<16x1xf32>
    %cst_87 = arith.constant 3.200000e+01 : f32
    %184 = vector.broadcast %cst_87 : f32 to vector<16x1xf32>
    %185 = arith.divf %183, %184 : vector<16x1xf32>
    %186 = vector.broadcast %185 : vector<16x1xf32> to vector<16x32xf32>
    %187 = arith.subf %177, %186 : vector<16x32xf32>
    %188 = arith.mulf %187, %187 : vector<16x32xf32>
    %cst_88 = arith.constant dense<0.000000e+00> : vector<16xf32>
    %189 = vector.multi_reduction <add>, %188, %cst_88 [1] : vector<16x32xf32> to vector<16xf32>
    %190 = vector.shape_cast %189 : vector<16xf32> to vector<16x1xf32>
    %cst_89 = arith.constant 3.200000e+01 : f32
    %191 = vector.broadcast %cst_89 : f32 to vector<16x1xf32>
    %192 = arith.divf %190, %191 : vector<16x1xf32>
    %193 = vector.broadcast %185 : vector<16x1xf32> to vector<16x32xf32>
    %194 = arith.subf %177, %193 : vector<16x32xf32>
    %cst_90 = arith.constant 9.99999996E-13 : f32
    %195 = vector.broadcast %cst_90 : f32 to vector<16x1xf32>
    %196 = arith.addf %192, %195 : vector<16x1xf32>
    %197 = math.rsqrt %196 : vector<16x1xf32>
    %198 = vector.broadcast %197 : vector<16x1xf32> to vector<16x32xf32>
    %199 = arith.mulf %194, %198 : vector<16x32xf32>
    %200 = vector.broadcast %179 : vector<1x32xf32> to vector<16x32xf32>
    %201 = arith.mulf %199, %200 : vector<16x32xf32>
    %202 = vector.broadcast %181 : vector<1x32xf32> to vector<16x32xf32>
    %203 = arith.addf %201, %202 : vector<16x32xf32>
    %204 = arith.truncf %203 : vector<16x32xf32> to vector<16x32xbf16>
    %c1_91 = arith.constant 1 : index
    %c0_92 = arith.constant 0 : index
    %c0_93 = arith.constant 0 : index
    %205 = vector.load %arg8[%c1_91, %c0_92, %c0_93] : memref<2x32x96xbf16, #tpu.memory_space<vmem>>, vector<1x32x96xbf16>
    %206 = vector.shape_cast %205 : vector<1x32x96xbf16> to vector<32x96xbf16>
    %cst_94 = arith.constant dense<0.000000e+00> : vector<16x96xf32>
    %207 = tpu.matmul %204, %206, %cst_94 {dimension_numbers = #tpu.dot_dimension_numbers<[1], [0], [0], [1], [0, 0, 1, 1], [], []>} : vector<16x32xbf16>, vector<32x96xbf16>, vector<16x96xf32> -> vector<16x96xf32>
    %c1_95 = arith.constant 1 : index
    %c0_96 = arith.constant 0 : index
    %c0_97 = arith.constant 0 : index
    %208 = vector.load %arg9[%c1_95, %c0_96, %c0_97] : memref<2x1x96xf32, #tpu.memory_space<vmem>>, vector<1x1x96xf32>
    %209 = vector.shape_cast %208 : vector<1x1x96xf32> to vector<1x96xf32>
    %210 = vector.broadcast %209 : vector<1x96xf32> to vector<16x96xf32>
    %211 = arith.addf %207, %210 : vector<16x96xf32>
    %212 = vector.shape_cast %211 : vector<16x96xf32> to vector<2x8x96xf32>
    %213 = vector.extract_strided_slice %212 {offsets = [0, 0, 0], sizes = [2, 8, 16], strides = [1, 1, 1]} : vector<2x8x96xf32> to vector<2x8x16xf32>
    %214 = vector.extract_strided_slice %212 {offsets = [0, 0, 32], sizes = [2, 8, 16], strides = [1, 1, 1]} : vector<2x8x96xf32> to vector<2x8x16xf32>
    %215 = vector.extract_strided_slice %212 {offsets = [0, 0, 64], sizes = [2, 8, 16], strides = [1, 1, 1]} : vector<2x8x96xf32> to vector<2x8x16xf32>
    %216 = arith.truncf %213 : vector<2x8x16xf32> to vector<2x8x16xbf16>
    %217 = arith.truncf %214 : vector<2x8x16xf32> to vector<2x8x16xbf16>
    "tpu.trace_start"() <{level = 10 : i32, message = "bqd,bkd->bqk"}> : () -> ()
    %cst_98 = arith.constant dense<0.000000e+00> : vector<2x8x8xf32>
    %218 = tpu.matmul %216, %217, %cst_98 {dimension_numbers = #tpu.dot_dimension_numbers<[2], [2], [1], [1], [0, 0, 0, 1, 1, 1], [0], [0]>} : vector<2x8x16xbf16>, vector<2x8x16xbf16>, vector<2x8x8xf32> -> vector<2x8x8xf32>
    "tpu.trace_stop"() : () -> ()
    %cst_99 = arith.constant 2.500000e-01 : f32
    %219 = vector.broadcast %cst_99 : f32 to vector<2x8x8xf32>
    %220 = arith.mulf %218, %219 : vector<2x8x8xf32>
    %221 = vector.broadcast %2 : vector<2x1x8xf32> to vector<2x8x8xf32>
    %222 = arith.addf %220, %221 : vector<2x8x8xf32>
    %cst_100 = arith.constant dense<0xFF800000> : vector<2x8xf32>
    %223 = vector.multi_reduction <maximumf>, %222, %cst_100 [2] : vector<2x8x8xf32> to vector<2x8xf32>
    %224 = vector.shape_cast %223 : vector<2x8xf32> to vector<2x8x1xf32>
    %225 = vector.broadcast %224 : vector<2x8x1xf32> to vector<2x8x8xf32>
    %226 = arith.subf %222, %225 : vector<2x8x8xf32>
    %227 = math.exp %226 : vector<2x8x8xf32>
    %cst_101 = arith.constant dense<0.000000e+00> : vector<2x8xf32>
    %228 = vector.multi_reduction <add>, %227, %cst_101 [2] : vector<2x8x8xf32> to vector<2x8xf32>
    %229 = vector.shape_cast %228 : vector<2x8xf32> to vector<2x8x1xf32>
    %230 = tpu.reciprocal %229 {approx = true} : vector<2x8x1xf32> -> vector<2x8x1xf32>
    %231 = vector.broadcast %230 : vector<2x8x1xf32> to vector<2x8x8xf32>
    %232 = arith.mulf %227, %231 : vector<2x8x8xf32>
    %233 = arith.truncf %232 : vector<2x8x8xf32> to vector<2x8x8xbf16>
    %234 = arith.truncf %215 : vector<2x8x16xf32> to vector<2x8x16xbf16>
    "tpu.trace_start"() <{level = 10 : i32, message = "bqk,bkd->bqd"}> : () -> ()
    %cst_102 = arith.constant dense<0.000000e+00> : vector<2x8x16xf32>
    %235 = tpu.matmul %233, %234, %cst_102 {dimension_numbers = #tpu.dot_dimension_numbers<[2], [1], [1], [2], [0, 0, 0, 1, 1, 2], [0], [0]>} : vector<2x8x8xbf16>, vector<2x8x16xbf16>, vector<2x8x16xf32> -> vector<2x8x16xf32>
    "tpu.trace_stop"() : () -> ()
    %236 = vector.shape_cast %235 : vector<2x8x16xf32> to vector<16x16xf32>
    %237 = arith.truncf %236 : vector<16x16xf32> to vector<16x16xbf16>
    %c1_103 = arith.constant 1 : index
    %c0_104 = arith.constant 0 : index
    %c0_105 = arith.constant 0 : index
    %c0_106 = arith.constant 0 : index
    %238 = vector.load %arg10[%c1_103, %c0_104, %c0_105, %c0_106] : memref<2x2x16x32xbf16, #tpu.memory_space<vmem>>, vector<1x1x16x32xbf16>
    %239 = vector.shape_cast %238 : vector<1x1x16x32xbf16> to vector<16x32xbf16>
    %cst_107 = arith.constant dense<0.000000e+00> : vector<16x32xf32>
    %240 = tpu.matmul %237, %239, %cst_107 {dimension_numbers = #tpu.dot_dimension_numbers<[1], [0], [0], [1], [0, 0, 1, 1], [], []>} : vector<16x16xbf16>, vector<16x32xbf16>, vector<16x32xf32> -> vector<16x32xf32>
    %241 = vector.extract_strided_slice %212 {offsets = [0, 0, 16], sizes = [2, 8, 16], strides = [1, 1, 1]} : vector<2x8x96xf32> to vector<2x8x16xf32>
    %242 = vector.extract_strided_slice %212 {offsets = [0, 0, 48], sizes = [2, 8, 16], strides = [1, 1, 1]} : vector<2x8x96xf32> to vector<2x8x16xf32>
    %243 = vector.extract_strided_slice %212 {offsets = [0, 0, 80], sizes = [2, 8, 16], strides = [1, 1, 1]} : vector<2x8x96xf32> to vector<2x8x16xf32>
    %244 = arith.truncf %241 : vector<2x8x16xf32> to vector<2x8x16xbf16>
    %245 = arith.truncf %242 : vector<2x8x16xf32> to vector<2x8x16xbf16>
    "tpu.trace_start"() <{level = 10 : i32, message = "bqd,bkd->bqk"}> : () -> ()
    %cst_108 = arith.constant dense<0.000000e+00> : vector<2x8x8xf32>
    %246 = tpu.matmul %244, %245, %cst_108 {dimension_numbers = #tpu.dot_dimension_numbers<[2], [2], [1], [1], [0, 0, 0, 1, 1, 1], [0], [0]>} : vector<2x8x16xbf16>, vector<2x8x16xbf16>, vector<2x8x8xf32> -> vector<2x8x8xf32>
    "tpu.trace_stop"() : () -> ()
    %cst_109 = arith.constant 2.500000e-01 : f32
    %247 = vector.broadcast %cst_109 : f32 to vector<2x8x8xf32>
    %248 = arith.mulf %246, %247 : vector<2x8x8xf32>
    %249 = vector.broadcast %2 : vector<2x1x8xf32> to vector<2x8x8xf32>
    %250 = arith.addf %248, %249 : vector<2x8x8xf32>
    %cst_110 = arith.constant dense<0xFF800000> : vector<2x8xf32>
    %251 = vector.multi_reduction <maximumf>, %250, %cst_110 [2] : vector<2x8x8xf32> to vector<2x8xf32>
    %252 = vector.shape_cast %251 : vector<2x8xf32> to vector<2x8x1xf32>
    %253 = vector.broadcast %252 : vector<2x8x1xf32> to vector<2x8x8xf32>
    %254 = arith.subf %250, %253 : vector<2x8x8xf32>
    %255 = math.exp %254 : vector<2x8x8xf32>
    %cst_111 = arith.constant dense<0.000000e+00> : vector<2x8xf32>
    %256 = vector.multi_reduction <add>, %255, %cst_111 [2] : vector<2x8x8xf32> to vector<2x8xf32>
    %257 = vector.shape_cast %256 : vector<2x8xf32> to vector<2x8x1xf32>
    %258 = tpu.reciprocal %257 {approx = true} : vector<2x8x1xf32> -> vector<2x8x1xf32>
    %259 = vector.broadcast %258 : vector<2x8x1xf32> to vector<2x8x8xf32>
    %260 = arith.mulf %255, %259 : vector<2x8x8xf32>
    %261 = arith.truncf %260 : vector<2x8x8xf32> to vector<2x8x8xbf16>
    %262 = arith.truncf %243 : vector<2x8x16xf32> to vector<2x8x16xbf16>
    "tpu.trace_start"() <{level = 10 : i32, message = "bqk,bkd->bqd"}> : () -> ()
    %cst_112 = arith.constant dense<0.000000e+00> : vector<2x8x16xf32>
    %263 = tpu.matmul %261, %262, %cst_112 {dimension_numbers = #tpu.dot_dimension_numbers<[2], [1], [1], [2], [0, 0, 0, 1, 1, 2], [0], [0]>} : vector<2x8x8xbf16>, vector<2x8x16xbf16>, vector<2x8x16xf32> -> vector<2x8x16xf32>
    "tpu.trace_stop"() : () -> ()
    %264 = vector.shape_cast %263 : vector<2x8x16xf32> to vector<16x16xf32>
    %265 = arith.truncf %264 : vector<16x16xf32> to vector<16x16xbf16>
    %c1_113 = arith.constant 1 : index
    %c1_114 = arith.constant 1 : index
    %c0_115 = arith.constant 0 : index
    %c0_116 = arith.constant 0 : index
    %266 = vector.load %arg10[%c1_113, %c1_114, %c0_115, %c0_116] : memref<2x2x16x32xbf16, #tpu.memory_space<vmem>>, vector<1x1x16x32xbf16>
    %267 = vector.shape_cast %266 : vector<1x1x16x32xbf16> to vector<16x32xbf16>
    %cst_117 = arith.constant dense<0.000000e+00> : vector<16x32xf32>
    %268 = tpu.matmul %265, %267, %cst_117 {dimension_numbers = #tpu.dot_dimension_numbers<[1], [0], [0], [1], [0, 0, 1, 1], [], []>} : vector<16x16xbf16>, vector<16x32xbf16>, vector<16x32xf32> -> vector<16x32xf32>
    %269 = arith.addf %240, %268 : vector<16x32xf32>
    %c1_118 = arith.constant 1 : index
    %c0_119 = arith.constant 0 : index
    %c0_120 = arith.constant 0 : index
    %270 = vector.load %arg11[%c1_118, %c0_119, %c0_120] : memref<2x1x32xf32, #tpu.memory_space<vmem>>, vector<1x1x32xf32>
    %271 = vector.shape_cast %270 : vector<1x1x32xf32> to vector<1x32xf32>
    %272 = vector.broadcast %271 : vector<1x32xf32> to vector<16x32xf32>
    %273 = arith.addf %269, %272 : vector<16x32xf32>
    %274 = arith.addf %273, %203 : vector<16x32xf32>
    %c1_121 = arith.constant 1 : index
    %c0_122 = arith.constant 0 : index
    %c0_123 = arith.constant 0 : index
    %275 = vector.load %arg12[%c1_121, %c0_122, %c0_123] : memref<2x1x32xf32, #tpu.memory_space<vmem>>, vector<1x1x32xf32>
    %276 = vector.shape_cast %275 : vector<1x1x32xf32> to vector<1x32xf32>
    %c1_124 = arith.constant 1 : index
    %c0_125 = arith.constant 0 : index
    %c0_126 = arith.constant 0 : index
    %277 = vector.load %arg13[%c1_124, %c0_125, %c0_126] : memref<2x1x32xf32, #tpu.memory_space<vmem>>, vector<1x1x32xf32>
    %278 = vector.shape_cast %277 : vector<1x1x32xf32> to vector<1x32xf32>
    %cst_127 = arith.constant dense<0.000000e+00> : vector<16xf32>
    %279 = vector.multi_reduction <add>, %274, %cst_127 [1] : vector<16x32xf32> to vector<16xf32>
    %280 = vector.shape_cast %279 : vector<16xf32> to vector<16x1xf32>
    %cst_128 = arith.constant 3.200000e+01 : f32
    %281 = vector.broadcast %cst_128 : f32 to vector<16x1xf32>
    %282 = arith.divf %280, %281 : vector<16x1xf32>
    %283 = vector.broadcast %282 : vector<16x1xf32> to vector<16x32xf32>
    %284 = arith.subf %274, %283 : vector<16x32xf32>
    %285 = arith.mulf %284, %284 : vector<16x32xf32>
    %cst_129 = arith.constant dense<0.000000e+00> : vector<16xf32>
    %286 = vector.multi_reduction <add>, %285, %cst_129 [1] : vector<16x32xf32> to vector<16xf32>
    %287 = vector.shape_cast %286 : vector<16xf32> to vector<16x1xf32>
    %cst_130 = arith.constant 3.200000e+01 : f32
    %288 = vector.broadcast %cst_130 : f32 to vector<16x1xf32>
    %289 = arith.divf %287, %288 : vector<16x1xf32>
    %290 = vector.broadcast %282 : vector<16x1xf32> to vector<16x32xf32>
    %291 = arith.subf %274, %290 : vector<16x32xf32>
    %cst_131 = arith.constant 9.99999996E-13 : f32
    %292 = vector.broadcast %cst_131 : f32 to vector<16x1xf32>
    %293 = arith.addf %289, %292 : vector<16x1xf32>
    %294 = math.rsqrt %293 : vector<16x1xf32>
    %295 = vector.broadcast %294 : vector<16x1xf32> to vector<16x32xf32>
    %296 = arith.mulf %291, %295 : vector<16x32xf32>
    %297 = vector.broadcast %276 : vector<1x32xf32> to vector<16x32xf32>
    %298 = arith.mulf %296, %297 : vector<16x32xf32>
    %299 = vector.broadcast %278 : vector<1x32xf32> to vector<16x32xf32>
    %300 = arith.addf %298, %299 : vector<16x32xf32>
    %301 = arith.truncf %300 : vector<16x32xf32> to vector<16x32xbf16>
    %c1_132 = arith.constant 1 : index
    %c0_133 = arith.constant 0 : index
    %c0_134 = arith.constant 0 : index
    %302 = vector.load %arg14[%c1_132, %c0_133, %c0_134] : memref<2x32x64xbf16, #tpu.memory_space<vmem>>, vector<1x32x64xbf16>
    %303 = vector.shape_cast %302 : vector<1x32x64xbf16> to vector<32x64xbf16>
    %cst_135 = arith.constant dense<0.000000e+00> : vector<16x64xf32>
    %304 = tpu.matmul %301, %303, %cst_135 {dimension_numbers = #tpu.dot_dimension_numbers<[1], [0], [0], [1], [0, 0, 1, 1], [], []>} : vector<16x32xbf16>, vector<32x64xbf16>, vector<16x64xf32> -> vector<16x64xf32>
    %c1_136 = arith.constant 1 : index
    %c0_137 = arith.constant 0 : index
    %c0_138 = arith.constant 0 : index
    %305 = vector.load %arg15[%c1_136, %c0_137, %c0_138] : memref<2x1x64xf32, #tpu.memory_space<vmem>>, vector<1x1x64xf32>
    %306 = vector.shape_cast %305 : vector<1x1x64xf32> to vector<1x64xf32>
    %307 = vector.broadcast %306 : vector<1x64xf32> to vector<16x64xf32>
    %308 = arith.addf %304, %307 : vector<16x64xf32>
    %cst_139 = arith.constant 5.000000e-01 : f32
    %309 = vector.broadcast %cst_139 : f32 to vector<16x64xf32>
    %310 = arith.mulf %309, %308 : vector<16x64xf32>
    %cst_140 = arith.constant 4.471500e-02 : f32
    %311 = vector.broadcast %cst_140 : f32 to vector<16x64xf32>
    %312 = arith.mulf %311, %308 : vector<16x64xf32>
    %313 = arith.mulf %312, %308 : vector<16x64xf32>
    %314 = arith.mulf %313, %308 : vector<16x64xf32>
    %315 = arith.addf %308, %314 : vector<16x64xf32>
    %cst_141 = arith.constant 0.797884583 : f32
    %316 = vector.broadcast %cst_141 : f32 to vector<16x64xf32>
    %317 = arith.mulf %316, %315 : vector<16x64xf32>
    %318 = math.tanh %317 : vector<16x64xf32>
    %cst_142 = arith.constant 1.000000e+00 : f32
    %319 = vector.broadcast %cst_142 : f32 to vector<16x64xf32>
    %320 = arith.addf %319, %318 : vector<16x64xf32>
    %321 = arith.mulf %310, %320 : vector<16x64xf32>
    %322 = arith.truncf %321 : vector<16x64xf32> to vector<16x64xbf16>
    %c1_143 = arith.constant 1 : index
    %c0_144 = arith.constant 0 : index
    %c0_145 = arith.constant 0 : index
    %323 = vector.load %arg16[%c1_143, %c0_144, %c0_145] : memref<2x64x32xbf16, #tpu.memory_space<vmem>>, vector<1x64x32xbf16>
    %324 = vector.shape_cast %323 : vector<1x64x32xbf16> to vector<64x32xbf16>
    %cst_146 = arith.constant dense<0.000000e+00> : vector<16x32xf32>
    %325 = tpu.matmul %322, %324, %cst_146 {dimension_numbers = #tpu.dot_dimension_numbers<[1], [0], [0], [1], [0, 0, 1, 1], [], []>} : vector<16x64xbf16>, vector<64x32xbf16>, vector<16x32xf32> -> vector<16x32xf32>
    %c1_147 = arith.constant 1 : index
    %c0_148 = arith.constant 0 : index
    %c0_149 = arith.constant 0 : index
    %326 = vector.load %arg17[%c1_147, %c0_148, %c0_149] : memref<2x1x32xf32, #tpu.memory_space<vmem>>, vector<1x1x32xf32>
    %327 = vector.shape_cast %326 : vector<1x1x32xf32> to vector<1x32xf32>
    %328 = vector.broadcast %327 : vector<1x32xf32> to vector<16x32xf32>
    %329 = arith.addf %325, %328 : vector<16x32xf32>
    %330 = arith.addf %329, %300 : vector<16x32xf32>
    %c1_150 = arith.constant 1 : index
    %c0_151 = arith.constant 0 : index
    %c0_152 = arith.constant 0 : index
    %331 = vector.load %arg18[%c1_150, %c0_151, %c0_152] : memref<2x1x32xf32, #tpu.memory_space<vmem>>, vector<1x1x32xf32>
    %332 = vector.shape_cast %331 : vector<1x1x32xf32> to vector<1x32xf32>
    %c1_153 = arith.constant 1 : index
    %c0_154 = arith.constant 0 : index
    %c0_155 = arith.constant 0 : index
    %333 = vector.load %arg19[%c1_153, %c0_154, %c0_155] : memref<2x1x32xf32, #tpu.memory_space<vmem>>, vector<1x1x32xf32>
    %334 = vector.shape_cast %333 : vector<1x1x32xf32> to vector<1x32xf32>
    %cst_156 = arith.constant dense<0.000000e+00> : vector<16xf32>
    %335 = vector.multi_reduction <add>, %330, %cst_156 [1] : vector<16x32xf32> to vector<16xf32>
    %336 = vector.shape_cast %335 : vector<16xf32> to vector<16x1xf32>
    %cst_157 = arith.constant 3.200000e+01 : f32
    %337 = vector.broadcast %cst_157 : f32 to vector<16x1xf32>
    %338 = arith.divf %336, %337 : vector<16x1xf32>
    %339 = vector.broadcast %338 : vector<16x1xf32> to vector<16x32xf32>
    %340 = arith.subf %330, %339 : vector<16x32xf32>
    %341 = arith.mulf %340, %340 : vector<16x32xf32>
    %cst_158 = arith.constant dense<0.000000e+00> : vector<16xf32>
    %342 = vector.multi_reduction <add>, %341, %cst_158 [1] : vector<16x32xf32> to vector<16xf32>
    %343 = vector.shape_cast %342 : vector<16xf32> to vector<16x1xf32>
    %cst_159 = arith.constant 3.200000e+01 : f32
    %344 = vector.broadcast %cst_159 : f32 to vector<16x1xf32>
    %345 = arith.divf %343, %344 : vector<16x1xf32>
    %346 = vector.broadcast %338 : vector<16x1xf32> to vector<16x32xf32>
    %347 = arith.subf %330, %346 : vector<16x32xf32>
    %cst_160 = arith.constant 9.99999996E-13 : f32
    %348 = vector.broadcast %cst_160 : f32 to vector<16x1xf32>
    %349 = arith.addf %345, %348 : vector<16x1xf32>
    %350 = math.rsqrt %349 : vector<16x1xf32>
    %351 = vector.broadcast %350 : vector<16x1xf32> to vector<16x32xf32>
    %352 = arith.mulf %347, %351 : vector<16x32xf32>
    %353 = vector.broadcast %332 : vector<1x32xf32> to vector<16x32xf32>
    %354 = arith.mulf %352, %353 : vector<16x32xf32>
    %355 = vector.broadcast %334 : vector<1x32xf32> to vector<16x32xf32>
    %356 = arith.addf %354, %355 : vector<16x32xf32>
    %357 = vector.extract_strided_slice %356 {offsets = [0, 0], sizes = [1, 32], strides = [1, 1]} : vector<16x32xf32> to vector<1x32xf32>
    %358 = vector.extract_strided_slice %356 {offsets = [8, 0], sizes = [1, 32], strides = [1, 1]} : vector<16x32xf32> to vector<1x32xf32>
    %359 = tpu.concatenate %357, %358 in 0 : vector<1x32xf32>, vector<1x32xf32> -> vector<2x32xf32>
    %360 = arith.truncf %359 : vector<2x32xf32> to vector<2x32xbf16>
    %c0_161 = arith.constant 0 : index
    %c0_162 = arith.constant 0 : index
    %361 = vector.load %arg20[%c0_161, %c0_162] : memref<32x32xbf16, #tpu.memory_space<vmem>>, vector<32x32xbf16>
    %cst_163 = arith.constant dense<0.000000e+00> : vector<2x32xf32>
    %362 = tpu.matmul %360, %361, %cst_163 {dimension_numbers = #tpu.dot_dimension_numbers<[1], [0], [0], [1], [0, 0, 1, 1], [], []>} : vector<2x32xbf16>, vector<32x32xbf16>, vector<2x32xf32> -> vector<2x32xf32>
    %c0_164 = arith.constant 0 : index
    %c0_165 = arith.constant 0 : index
    %363 = vector.load %arg21[%c0_164, %c0_165] : memref<1x32xf32, #tpu.memory_space<vmem>>, vector<1x32xf32>
    %364 = vector.broadcast %363 : vector<1x32xf32> to vector<2x32xf32>
    %365 = arith.addf %362, %364 : vector<2x32xf32>
    %366 = math.tanh %365 : vector<2x32xf32>
    %367 = arith.truncf %366 : vector<2x32xf32> to vector<2x32xbf16>
    %c0_166 = arith.constant 0 : index
    %c0_167 = arith.constant 0 : index
    %368 = vector.load %arg22[%c0_166, %c0_167] : memref<32x128xbf16, #tpu.memory_space<vmem>>, vector<32x128xbf16>
    %cst_168 = arith.constant dense<0.000000e+00> : vector<2x128xf32>
    %369 = tpu.matmul %367, %368, %cst_168 {dimension_numbers = #tpu.dot_dimension_numbers<[1], [0], [0], [1], [0, 0, 1, 1], [], []>} : vector<2x32xbf16>, vector<32x128xbf16>, vector<2x128xf32> -> vector<2x128xf32>
    %c0_169 = arith.constant 0 : index
    %c0_170 = arith.constant 0 : index
    %370 = vector.load %arg23[%c0_169, %c0_170] : memref<1x128xf32, #tpu.memory_space<vmem>>, vector<1x128xf32>
    %371 = vector.broadcast %370 : vector<1x128xf32> to vector<2x128xf32>
    %372 = arith.addf %369, %371 : vector<2x128xf32>
    %c0_171 = arith.constant 0 : index
    %c0_172 = arith.constant 0 : index
    %373 = vector.load %arg24[%c0_171, %c0_172] : memref<2x128xf32, #tpu.memory_space<vmem>>, vector<2x128xf32>
    tpu.vector_store %arg24[%c0_171, %c0_172], %372 {strides = array<i32>} : memref<2x128xf32, #tpu.memory_space<vmem>>, vector<2x128xf32>,
    return
  }
}

</mosaic_0001>

<bundles_post_ra>
// kernel: bert_classifier_forward.1
= control target key start
LH: loop header
LB: loop body
LE: loop exit
PB: predicated region body
PF: predicated region fallthrough
CT: control target
= control target key end

     0   :  { %s3566_s0 = inlined_call_operand.vmem [shape: s32[16,1], index: 0, kind: input, shape index: {}]   ;;  %s3567_s1 = inlined_call_operand.vmem [shape: s32[16,1], index: 1, kind: input, shape index: {}]   ;;  %s3568_s2 = inlined_call_operand.vmem [shape: f32[2,1,8], index: 2, kind: input, shape index: {}]   ;;  %s3569_s3 = inlined_call_operand.vmem [shape: bf16[128,32], index: 3, kind: input, shape index: {}]   ;;  %s3570_s4 = inlined_call_operand.vmem [shape: f32[64,32], index: 4, kind: input, shape index: {}]   ;;  %s3571_s5 = inlined_call_operand.vmem [shape: bf16[128,32], index: 5, kind: input, shape index: {}]   ;;  %s3572_s6 = inlined_call_operand.vmem [shape: f32[1,32], index: 6, kind: input, shape index: {}]   ;;  %s3573_s7 = inlined_call_operand.vmem [shape: f32[1,32], index: 7, kind: input, shape index: {}]   ;;  %s3574_s8 = inlined_call_operand.vmem [shape: bf16[2,32,96], index: 8, kind: input, shape index: {}]   ;;  %s3575_s9 = inlined_call_operand.vmem [shape: f32[2,1,96], index: 9, kind: input, shape index: {}]   ;;  %s3576_s10 = inlined_call_operand.vmem [shape: bf16[2,2,16,32], index: 10, kind: input, shape index: {}]   ;;  %s3577_s11 = inlined_call_operand.vmem [shape: f32[2,1,32], index: 11, kind: input, shape index: {}]   ;;  %s3578_s12 = inlined_call_operand.vmem [shape: f32[2,1,32], index: 12, kind: input, shape index: {}]   ;;  %s3579_s13 = inlined_call_operand.vmem [shape: f32[2,1,32], index: 13, kind: input, shape index: {}]   ;;  %s3580_s14 = inlined_call_operand.vmem [shape: bf16[2,32,64], index: 14, kind: input, shape index: {}]   ;;  %s3581_s15 = inlined_call_operand.vmem [shape: f32[2,1,64], index: 15, kind: input, shape index: {}]   ;;  %s3582_s16 = inlined_call_operand.vmem [shape: bf16[2,64,32], index: 16, kind: input, shape index: {}]   ;;  %s3583_s17 = inlined_call_operand.vmem [shape: f32[2,1,32], index: 17, kind: input, shape index: {}]   ;;  %s3584_s18 = inlined_call_operand.vmem [shape: f32[2,1,32], index: 18, kind: input, shape index: {}]   ;;  %s3585_s19 = inlined_call_operand.vmem [shape: f32[2,1,32], index: 19, kind: input, shape index: {}]   ;;  %s3586_s20 = inlined_call_operand.vmem [shape: bf16[32,32], index: 20, kind: input, shape index: {}]   ;;  %s3587_s21 = inlined_call_operand.vmem [shape: f32[1,32], index: 21, kind: input, shape index: {}]   ;;  %s3588_s22 = inlined_call_operand.vmem [shape: bf16[32,128], index: 22, kind: input, shape index: {}]   ;;  %s3589_s23 = inlined_call_operand.vmem [shape: f32[1,128], index: 23, kind: input, shape index: {}]   ;;  %s3590_s24 = inlined_call_operand.hbm [shape: f32[2,128], index: 24, kind: output, shape index: {}]  }
   0x1   :  { %3598 = sst [smem:[#allocation5_spill]] %s3566_s0 }
   0x2   :  { %3599 = sst [smem:[#allocation6_spill]] %s3567_s1 }
   0x3   :  { %3600 = sst [smem:[#allocation7_spill]] %s3568_s2 }
   0x4   :  { %3601 = sst [smem:[#allocation8_spill]] %s3569_s3 }
   0x5   :  { %3602 = sst [smem:[#allocation9_spill]] %s3570_s4 }
   0x6   :  { %3603 = sst [smem:[#allocation10_spill]] %s3571_s5 }
   0x7   :  { %3604 = sst [smem:[#allocation11_spill]] %s3572_s6 }
   0x8   :  { %3605 = sst [smem:[#allocation12_spill]] %s3573_s7 }
   0x9   :  { %3606 = sst [smem:[#allocation13_spill]] %s3574_s8 }
   0xa   :  { %3607 = sst [smem:[#allocation14_spill]] %s3585_s19 }
   0xb   :  { %s3608_s27 = sld [smem:[#allocation6_spill]]  ;;  %s3609_s19 = sld [smem:[#allocation5_spill]]  ;;  %v2927_v2 = vmov 0   ;;  %v2928_v6 = vmov 0.0   ;;  %vm2929_vm0 = vmmov 0  }
   0xc   :  { %2800 = vset.pattern.permute.xlu1 %v2927_v2  ;;  %2799 = vset.pattern.permute.xlu0 %v2927_v2  ;;  %s3610_s25 = sld [smem:[#allocation10_spill]]  ;;  %s3611_s1 = sld [smem:[#allocation8_spill]] }
   0xd   :  { %2557 = vmatprep.subr.bf16.mxu0 %v2928_v6  ;;  %2577 = vmatprep.subr.bf16.mxu1 %v2928_v6 }
   0xe   :  { %2573 = vmatprep.mubr.msk.bf16.mxu0 %vm2929_vm0, %v2928_v6  ;;  %2593 = vmatprep.mubr.msk.bf16.mxu1 %vm2929_vm0, %v2928_v6 }
  0x11   :  { %v81_v0 = vld [vmem:[%s3608_s27] sm:$0xff]  ;;  %v82_v3 = vld [vmem:[%s3608_s27 + $0x8] sm:$0xff] }
  0x12   :  { %v79_v1 = vld [vmem:[%s3609_s19] sm:$0xff]  ;;  %v80_v4 = vld [vmem:[%s3609_s19 + $0x8] sm:$0xff]  ;;  %101 = vperm.xlu1 %2800, %v81_v0   ;;  %v2805_v10 = vld [vmem:[%s3610_s25 + $0x10] sm:$0xff]  }
  0x13   :  { %88 = vperm.xlu0 %2799, %v79_v1   ;;  %v2801_v5 = vld [vmem:[%s3610_s25] sm:$0xff]   ;;  %v2803_v8 = vld [vmem:[%s3610_s25 + $0x8] sm:$0xff]   ;;  %v2806_v11 = vld [vmem:[%s3611_s1 + $0x10] sm:$0xff]  }
  0x14   :  { %v2802_v7 = vld [vmem:[%s3611_s1] sm:$0xff]   ;;  %2558 = vmatpush3.bf16.msra.mxu0 %v2801_v5  ;;  %v2804_v9 = vld [vmem:[%s3611_s1 + $0x8] sm:$0xff]   ;;  %v2807_v12 = vld [vmem:[%s3610_s25 + $0x18] sm:$0xff]  }
  0x15   :  { %2578 = vmatpush3.bf16.msra.mxu1 %v2802_v7  ;;  %2559 = vmatprep.subr.bf16.mxu0 %v2928_v6  ;;  %v2808_v13 = vld [vmem:[%s3611_s1 + $0x18] sm:$0xff]   ;;  %v2809_v14 = vld [vmem:[%s3610_s25 + $0x20] sm:$0xff]   ;;  %v2811_v16 = vld [vmem:[%s3610_s25 + $0x28] sm:$0xff]  }
  0x16   :  { %104 = vperm.xlu1 %2800, %v82_v3   ;;  %2579 = vmatprep.subr.bf16.mxu1 %v2928_v6  ;;  %v2810_v15 = vld [vmem:[%s3611_s1 + $0x20] sm:$0xff]   ;;  %v2812_v17 = vld [vmem:[%s3611_s1 + $0x28] sm:$0xff]   ;;  %v2813_v18 = vld [vmem:[%s3610_s25 + $0x30] sm:$0xff]  }
  0x17   :  { %91 = vperm.xlu0 %2799, %v80_v4   ;;  %v2814_v19 = vld [vmem:[%s3611_s1 + $0x30] sm:$0xff]   ;;  %v2815_v20 = vld [vmem:[%s3610_s25 + $0x38] sm:$0xff]  }
  0x18   :  { %2560 = vmatpush3.bf16.msra.mxu0 %v2803_v8  ;;  %v2816_v21 = vld [vmem:[%s3611_s1 + $0x38] sm:$0xff]  }
  0x19   :  { %2580 = vmatpush3.bf16.msra.mxu1 %v2804_v9  ;;  %2561 = vmatprep.subr.bf16.mxu0 %v2928_v6 }
  0x1a   :  { %2581 = vmatprep.subr.bf16.mxu1 %v2928_v6 }
  0x1c   :  { %2562 = vmatpush3.bf16.msra.mxu0 %v2805_v10 }
  0x1d   :  { %2582 = vmatpush3.bf16.msra.mxu1 %v2806_v11  ;;  %2563 = vmatprep.subr.bf16.mxu0 %v2928_v6 }
  0x1e   :  { %2583 = vmatprep.subr.bf16.mxu1 %v2928_v6 }
  0x20   :  { %2564 = vmatpush3.bf16.msra.mxu0 %v2807_v12 }
  0x21   :  { %2584 = vmatpush3.bf16.msra.mxu1 %v2808_v13  ;;  %2565 = vmatprep.subr.bf16.mxu0 %v2928_v6 }
  0x22   :  { %2585 = vmatprep.subr.bf16.mxu1 %v2928_v6 }
  0x24   :  { %2566 = vmatpush3.bf16.msra.mxu0 %v2809_v14 }
  0x25   :  { %2586 = vmatpush3.bf16.msra.mxu1 %v2810_v15  ;;  %2567 = vmatprep.subr.bf16.mxu0 %v2928_v6 }
  0x26   :  { %2587 = vmatprep.subr.bf16.mxu1 %v2928_v6 }
  0x28   :  { %2568 = vmatpush3.bf16.msra.mxu0 %v2811_v16 }
  0x29   :  { %2588 = vmatpush3.bf16.msra.mxu1 %v2812_v17  ;;  %2569 = vmatprep.subr.bf16.mxu0 %v2928_v6 }
  0x2a   :  { %2589 = vmatprep.subr.bf16.mxu1 %v2928_v6 }
  0x2c   :  { %2570 = vmatpush3.bf16.msra.mxu0 %v2813_v18 }
  0x2d   :  { %2590 = vmatpush3.bf16.msra.mxu1 %v2814_v19  ;;  %2571 = vmatprep.subr.bf16.mxu0 %v2928_v6 }
  0x2e   :  { %2591 = vmatprep.subr.bf16.mxu1 %v2928_v6 }
  0x30   :  { %2572 = vmatpush3.bf16.msra.mxu0 %v2815_v20 }
  0x31   :  { %2592 = vmatpush3.bf16.msra.mxu1 %v2816_v21  ;;  %2597 = vmatprep.subr.bf16.mxu0 %v2928_v6 }
  0x32   :  { %29 = vsyncpa [#allocation3], 0  ;;  %2605 = vmatprep.subr.bf16.mxu1 %v2928_v6  ;;  %v85_v22 = vlaneseq  ;;  %v2930_v28 = vmov 1.0|1.0   ;;  %s3612_s5 = sld [smem:[#allocation9_spill]]  ;;  %vm328_vm7 = vcmask 261120  }
  0x33   :  { %s3613_s27 = sld [smem:[#allocation13_spill]]  ;;  %s3614_s0 = sld [smem:[#allocation11_spill]]  ;;  %v2369_v10 = vld [vmem:[%s3575_s9] ss:$0 sm:$0xff]  ;;  %vm445_vm8 = vcmask 130048   ;;  %vm557_vm9 = vcmask 64512  }
  0x34   :  { %v86_v25 = vand.u32 127, %v85_v22  ;;  %s3615_s3 = sld [smem:[#allocation12_spill]]  ;;  %s2931_s25 = smov 96   ;;  %vm587_vm10 = vcmask 1043456   ;;  %vm1191_vm11 = vcmask 523264   ;;  %vm2191_vm12 = vcmask 1040384  }
  0x35   :  { %s3616_s26 = sld [smem:[#allocation7_spill]]  ;;  %s2932_s6 = smov 64  }
  0x36   :  { %s2933_s2 = smov 80   ;;  %s2934_s29 = smov 112  }
  0x37   :  { %s3617_s8 = sld [smem:[#allocation14_spill]] }
  0x38   :  { %v323_v32 = vld [vmem:[%s3612_s5] sm:$0xff] }
  0x39   :  { %v2817_v54 = vld [vmem:[%s3613_s27] sm:$0xff]   ;;  %v2818_v55 = vld [vmem:[%s3613_s27 + $0x8] sm:$0xff]  }
  0x3a   :  { %v2367_v0 = vld [vmem:[%s3614_s0] ss:$0 sm:$0xff]  ;;  %s2935_s0 = smov 48  }
  0x3b   :  { %v2368_v4 = vld [vmem:[%s3615_s3] ss:$0 sm:$0xff] }
  0x91   :  { %v102_v23 = vpop.permute.xlu1 %101 }
  0x92   :  { %v89_v24 = vpop.permute.xlu0 %88  ;;  %vm106_vm1 = vcmp.eq.s32.totalorder %v102_v23, %v86_v25 }
  0x93   :  { %vm93_vm4 = vcmp.eq.s32.totalorder %v89_v24, %v86_v25  ;;  %v3204_v24 = vld [vmem:[%s3616_s26] ss:$0 sm:$0xff] }
  0x95   :  { %v105_v26 = vpop.permute.xlu1 %104 }
  0x96   :  { %v92_v27 = vpop.permute.xlu0 %91  ;;  %vm107_vm2 = vcmp.eq.s32.totalorder %v105_v26, %v86_v25 }
  0x97   :  { %vm94_vm3 = vcmp.eq.s32.totalorder %v92_v27, %v86_v25  ;;  %vm2355_vm5 = vmpackc.low %vm107_vm2, %vm106_vm1 }
  0x98   :  { %vm2365_vm6 = vmpackc.low %vm94_vm3, %vm93_vm4  ;;  %2574 = vmatmul.mubr.msk.bf16.vlgmr.msra.gmra.mrb[0].mxu0 %vm2355_vm5, %v2930_v28 }
  0x99   :  { %2594 = vmatmul.mubr.msk.bf16.vlgmr.msra.gmra.mrb[0].mxu1 %vm2365_vm6, %v2930_v28  ;;  %2601 = vmatprep.mubr.msk.bf16.mxu0 %vm2929_vm0, %v2928_v6 }
  0x9a   :  { %2607 = vmatprep.mubr.msk.bf16.mxu1 %vm2929_vm0, %v2928_v6  ;;  %2598 = vmatpush3.bf16.msra.mxu0 %v2817_v54 }
  0x9b   :  { %2599 = vmatprep.subr.bf16.mxu0 %v2928_v6 }
  0x9e   :  { %2600 = vmatpush3.bf16.msra.mxu0 %v2818_v55 }
  0x9f   :  { %2611 = vmatprep.subr.bf16.mxu0 %v2928_v6 }
 0x16b   :  { %v227_v29 = vpop.f32.mrb[0].mxu0 }
 0x16c   :  { %v316_v30 = vpop.f32.mrb[0].mxu1  ;;  %v2575_v31 = vpop.f32.mrb[1].mxu0 }
 0x16d   :  { %v317_v33 = vadd.f32 %v316_v30, %v227_v29  ;;  %v2595_v34 = vpop.f32.mrb[1].mxu1  ;;  %v230_v35 = vpop.f32.mrb[2].mxu0  ;;  %v3209_v29 = vld [vmem:[%s3616_s26 + $0x1] ss:$0 sm:$0xff] }
 0x16e   :  { %v319_v36 = vpop.f32.mrb[2].mxu1  ;;  %v2576_v37 = vpop.f32.mrb[3].mxu0 }
 0x16f   :  { %v320_v38 = vadd.f32 %v319_v36, %v230_v35  ;;  %v2596_v39 = vpop.f32.mrb[3].mxu1  ;;  %v324_v40 = vadd.f32 %v323_v32, %v317_v33 }
 0x171   :  { %v329_v41 = vsel %vm328_vm7, %v324_v40, 0.0  ;;  %v325_v42 = vadd.f32 %v323_v32, %v320_v38 }
 0x172   :  { %330 = vadd.xlane.f32.xlu0 %v329_v41 }
 0x173   :  { %v332_v43 = vsel %vm328_vm7, %v325_v42, 0.0 }
 0x174   :  { %333 = vadd.xlane.f32.xlu1 %v332_v43 }
 0x1ff   :  { %v331_v44 = vpop.xlane.xlu0 %330 }
 0x200   :  { %v336_v45 = vmul.f32 0.03125, %v331_v44 }
 0x201   :  { %v334_v46 = vpop.xlane.xlu1 %333 }
 0x202   :  { %v338_v47 = vsub.f32 %v324_v40, %v336_v45  ;;  %v337_v48 = vmul.f32 0.03125, %v334_v46 }
 0x204   :  { %v339_v49 = vsub.f32 %v325_v42, %v337_v48  ;;  %v340_v50 = vmul.f32 %v338_v47, %v338_v47 }
 0x206   :  { %v342_v51 = vsel %vm328_vm7, %v340_v50, 0.0  ;;  %v341_v52 = vmul.f32 %v339_v49, %v339_v49 }
 0x207   :  { %343 = vadd.xlane.f32.xlu0 %v342_v51 }
 0x208   :  { %v345_v53 = vsel %vm328_vm7, %v341_v52, 0.0 }
 0x20b   :  { %346 = vadd.xlane.f32.xlu0 %v345_v53 }
 0x294   :  { %v344_v56 = vpop.xlane.xlu0 %343 }
 0x295   :  { %v348_v57 = vmul.f32 0.03125, %v344_v56 }
 0x297   :  { %v350_v58 = vadd.f32 1e-12, %v348_v57 }
 0x298   :  { %v347_v59 = vpop.xlane.xlu0 %346 }
 0x299   :  { %2841 = vrsqrt.f32 %v350_v58  ;;  %v349_v60 = vmul.f32 0.03125, %v347_v59 }
 0x29b   :  { %v351_v61 = vadd.f32 1e-12, %v349_v60 }
 0x29d   :  { %2843 = vrsqrt.f32 %v351_v61 }
 0x2a3   :  { %v2842_v62 = vpop.eup %2841 }
 0x2a4   :  { %v354_v63 = vmul.f32 %v2842_v62, %v338_v47 }
 0x2a6   :  { %v362_v2 = vmul.f32 %v2367_v0, %v354_v63 }
 0x2a7   :  { %v2844_v1 = vpop.eup %2843 }
 0x2a8   :  { %v355_v3 = vmul.f32 %v2844_v1, %v339_v49  ;;  %v3169_v7 = vadd.f32 %v2368_v4, %v362_v2 }
 0x2aa   :  { %v363_v5 = vmul.f32 %v2367_v0, %v355_v3 }
 0x2ac   :  { %v3171_v8 = vadd.f32 %v2368_v4, %v363_v5 }
 0x2ae   :  { %v372_v9 = vpack.c.bf16 %v3171_v8, %v3169_v7 }
 0x2b0   :  { %2602 = vmatmul.mubr.msk.bf16.vlgmr.msra.gmra.mrb[4].mxu0 %vm328_vm7, %v372_v9 }
 0x2b1   :  { %2613 = vmatprep.mubr.msk.bf16.mxu0 %vm2929_vm0, %v2928_v6 }
 0x383   :  { %v433_v11 = vpop.f32.mrb[4].mxu0 }
 0x384   :  { %v434_v12 = vadd.f32 %v2369_v10, %v433_v11  ;;  %v2603_v13 = vpop.f32.mrb[5].mxu0 }
 0x385   :  { %v436_v14 = vpop.f32.mrb[6].mxu0 }
 0x386   :  { %v3181_v15 = vpack.c.bf16 %v434_v12, %v434_v12  ;;  %v437_v16 = vadd.f32 %v2369_v10, %v436_v14  ;;  %v2604_v17 = vpop.f32.mrb[7].mxu0 }
 0x388   :  { %v3183_v18 = vpack.c.bf16 %v437_v16, %v437_v16  ;;  %443 = vrot.lane.b32.xlu1 %v3181_v15, %s2931_s25 }
 0x38a   :  { %493 = vrot.lane.b32.xlu0 %v3183_v18, %s2931_s25 }
 0x3fa   :  { %v444_v19 = vpop.permute.xlu1 %443 }
 0x3fb   :  { %v450_v20 = vsel %vm445_vm8, %v444_v19, 0 }
 0x3fc   :  { %2606 = vmatpush3.bf16.xpose.msra.mxu1 %v450_v20  ;;  %v494_v21 = vpop.permute.xlu0 %493 }
 0x3fd   :  { %v499_v22 = vsel %vm445_vm8, %v494_v21, 0  ;;  %2617 = vmatprep.subr.bf16.mxu1 %v2928_v6 }
 0x3fe   :  { %2612 = vmatpush3.bf16.xpose.msra.mxu0 %v499_v22 }
 0x3ff   :  { %2623 = vmatprep.subr.bf16.mxu0 %v2928_v6 }
 0x403   :  { %2608 = vmatmul.mubr.msk.bf16.vlgmr.msra.gmra.mrb[4].mxu1 %vm445_vm8, %v3181_v15 }
 0x404   :  { %2619 = vmatprep.mubr.msk.bf16.mxu1 %vm2929_vm0, %v2928_v6 }
 0x405   :  { %2614 = vmatmul.mubr.msk.bf16.vlgmr.msra.gmra.mrb[8].mxu0 %vm445_vm8, %v3183_v18 }
 0x406   :  { %2625 = vmatprep.mubr.msk.bf16.mxu0 %vm2929_vm0, %v2928_v6 }
 0x4d6   :  { %v486_v23 = vpop.f32.mrb[4].mxu1 }
 0x4d7   :  { %v541_v25 = vmul.f32 0.25, %v486_v23  ;;  %v2609_v26 = vpop.f32.mrb[5].mxu1 }
 0x4d8   :  { %v489_v27 = vpop.f32.mrb[6].mxu1  ;;  %v535_v28 = vpop.f32.mrb[8].mxu0 }
 0x4d9   :  { %v542_v30 = vmul.f32 0.25, %v535_v28  ;;  %v2610_v31 = vpop.f32.mrb[7].mxu1  ;;  %v2615_v32 = vpop.f32.mrb[9].mxu0  ;;  %v555_v33 = vadd.f32 %v3204_v24, %v541_v25 }
 0x4da   :  { %v538_v34 = vpop.f32.mrb[10].mxu0 }
 0x4db   :  { %v2616_v35 = vpop.f32.mrb[11].mxu0  ;;  %v558_v36 = vsel %vm557_vm9, %v555_v33, -inf  ;;  %v556_v37 = vadd.f32 %v3209_v29, %v542_v30 }
 0x4dc   :  { %559 = vmax.xlane.f32.xlu1 %v558_v36 }
 0x4dd   :  { %v561_v38 = vsel %vm557_vm9, %v556_v37, -inf }
 0x4de   :  { %562 = vmax.xlane.f32.xlu0 %v561_v38 }
 0x4ed   :  { %582 = vrot.lane.b32.xlu1 %v3181_v15, %s2932_s6 }
 0x569   :  { %v560_v39 = vpop.xlane.xlu1 %559 }
 0x56a   :  { %v564_v40 = vsub.f32 %v555_v33, %v560_v39 }
 0x56b   :  { %v563_v41 = vpop.xlane.xlu0 %562 }
 0x56c   :  { %v566_v42 = vmul.f32 1.442695, %v564_v40  ;;  %v565_v43 = vsub.f32 %v556_v37, %v563_v41 }
 0x56d   :  { %v583_v44 = vpop.permute.xlu1 %582 }
 0x56e   :  { %2845 = vpow2.f32 %v566_v42  ;;  %v568_v45 = vmul.f32 1.442695, %v565_v43  ;;  %v589_v46 = vsel %vm587_vm10, %v583_v44, 0 }
 0x56f   :  { %2618 = vmatpush3.bf16.msra.mxu1 %v589_v46 }
 0x570   :  { %2847 = vpow2.f32 %v568_v45  ;;  %2629 = vmatprep.subr.bf16.mxu1 %v2928_v6 }
 0x578   :  { %v2846_v47 = vpop.eup %2845 }
 0x579   :  { %v570_v48 = vsel %vm557_vm9, %v2846_v47, 0.0 }
 0x57a   :  { %v2848_v49 = vpop.eup %2847  ;;  %571 = vadd.xlane.f32.xlu1 %v570_v48 }
 0x57b   :  { %v573_v50 = vsel %vm557_vm9, %v2848_v49, 0.0 }
 0x57c   :  { %574 = vadd.xlane.f32.xlu0 %v573_v50 }
 0x58b   :  { %684 = vrot.lane.b32.xlu1 %v3181_v15, %s2933_s2 }
 0x58f   :  { %734 = vrot.lane.b32.xlu1 %v3183_v18, %s2933_s2 }
 0x592   :  { %631 = vrot.lane.b32.xlu0 %v3183_v18, %s2932_s6 }
 0x593   :  { %732 = vrot.lane.b32.xlu1 %v3183_v18, %s2934_s29 }
 0x596   :  { %682 = vrot.lane.b32.xlu0 %v3181_v15, %s2934_s29 }
 0x607   :  { %v572_v51 = vpop.xlane.xlu1 %571 }
 0x608   :  { %2849 = vrcp.f32 %v572_v51 }
 0x609   :  { %v575_v52 = vpop.xlane.xlu0 %574 }
 0x60a   :  { %2851 = vrcp.f32 %v575_v52 }
 0x60b   :  { %v685_v55 = vpop.permute.xlu1 %684 }
 0x60c   :  { %v690_v62 = vsel %vm445_vm8, %v685_v55, 0 }
 0x60d   :  { %v632_v53 = vpop.permute.xlu0 %631 }
 0x60e   :  { %v637_v54 = vsel %vm587_vm10, %v632_v53, 0 }
 0x60f   :  { %2624 = vmatpush3.bf16.msra.mxu0 %v637_v54  ;;  %v735_v61 = vpop.permute.xlu1 %734  ;;  %v2820_v54 = vld [vmem:[%s3576_s10 + $0x8] sm:$0xff]  }
 0x610   :  { %2635 = vmatprep.subr.bf16.mxu0 %v2928_v6  ;;  %v740_v0 = vsel %vm445_vm8, %v735_v61, 0 }
 0x611   :  { %v683_v1 = vpop.permute.xlu0 %682 }
 0x612   :  { %v2850_v56 = vpop.eup %2849 }
 0x613   :  { %v578_v57 = vmul.f32 %v2850_v56, %v2846_v47  ;;  %v733_v2 = vpop.permute.xlu1 %732 }
 0x614   :  { %v2852_v58 = vpop.eup %2851 }
 0x615   :  { %v579_v59 = vmul.f32 %v2852_v58, %v2848_v49  ;;  %v580_v60 = vpack.c.bf16 %v578_v57, %v578_v57 }
 0x617   :  { %2620 = vmatmul.mubr.msk.bf16.vlgmr.msra.gmra.mrb[8].mxu1 %vm557_vm9, %v580_v60  ;;  %v581_v63 = vpack.c.bf16 %v579_v59, %v579_v59 }
 0x618   :  { %2630 = vmatpush3.bf16.xpose.msra.mxu1 %v690_v62  ;;  %2631 = vmatprep.mubr.msk.bf16.mxu1 %vm2929_vm0, %v2928_v6 }
 0x619   :  { %2626 = vmatmul.mubr.msk.bf16.vlgmr.msra.gmra.mrb[12].mxu0 %vm557_vm9, %v581_v63  ;;  %2641 = vmatprep.subr.bf16.mxu1 %v2928_v6 }
 0x61a   :  { %2636 = vmatpush3.bf16.xpose.msra.mxu0 %v740_v0  ;;  %2637 = vmatprep.mubr.msk.bf16.mxu0 %vm2929_vm0, %v2928_v6 }
 0x61b   :  { %2647 = vmatprep.subr.bf16.mxu0 %v2928_v6 }
 0x61f   :  { %2632 = vmatmul.mubr.msk.bf16.vlgmr.msra.gmra.mrb[12].mxu1 %vm445_vm8, %v683_v1 }
 0x620   :  { %2643 = vmatprep.mubr.msk.bf16.mxu1 %vm2929_vm0, %v2928_v6 }
 0x621   :  { %2638 = vmatmul.mubr.msk.bf16.vlgmr.msra.gmra.mrb[16].mxu0 %vm445_vm8, %v733_v2 }
 0x622   :  { %2649 = vmatprep.mubr.msk.bf16.mxu0 %vm2929_vm0, %v2928_v6 }
 0x6ea   :  { %v3249_v3 = vpop.f32.mrb[8].mxu1 }
 0x6eb   :  { %v2621_v4 = vpop.f32.mrb[9].mxu1 }
 0x6ec   :  { %v628_v5 = vpop.f32.mrb[10].mxu1  ;;  %v3251_v9 = vpop.f32.mrb[12].mxu0 }
 0x6ed   :  { %v679_v10 = vpack.c.bf16 %v3251_v9, %v3249_v3  ;;  %v2622_v11 = vpop.f32.mrb[11].mxu1  ;;  %v2627_v12 = vpop.f32.mrb[13].mxu0  ;;  %v2389_v5 = vld [vmem:[%s3577_s11] ss:$0 sm:$0xff] }
 0x6ee   :  { %v676_v13 = vpop.f32.mrb[14].mxu0 }
 0x6ef   :  { %v2628_v14 = vpop.f32.mrb[15].mxu0 }
 0x6f2   :  { %v726_v16 = vpop.f32.mrb[12].mxu1 }
 0x6f3   :  { %v782_v17 = vmul.f32 0.25, %v726_v16  ;;  %v2633_v19 = vpop.f32.mrb[13].mxu1 }
 0x6f4   :  { %v729_v20 = vpop.f32.mrb[14].mxu1  ;;  %v776_v21 = vpop.f32.mrb[16].mxu0 }
 0x6f5   :  { %v783_v22 = vmul.f32 0.25, %v776_v21  ;;  %v2634_v23 = vpop.f32.mrb[15].mxu1  ;;  %v2639_v25 = vpop.f32.mrb[17].mxu0  ;;  %v784_v26 = vadd.f32 %v3204_v24, %v782_v17 }
 0x6f6   :  { %v779_v27 = vpop.f32.mrb[18].mxu0 }
 0x6f7   :  { %v2640_v28 = vpop.f32.mrb[19].mxu0  ;;  %v786_v30 = vsel %vm557_vm9, %v784_v26, -inf  ;;  %v785_v31 = vadd.f32 %v3209_v29, %v783_v22 }
 0x6f8   :  { %787 = vmax.xlane.f32.xlu0 %v786_v30 }
 0x6f9   :  { %v789_v32 = vsel %vm557_vm9, %v785_v31, -inf }
 0x6fa   :  { %790 = vmax.xlane.f32.xlu1 %v789_v32 }
 0x70b   :  { %810 = vrot.lane.b32.xlu1 %v3181_v15, %s2935_s0 }
 0x785   :  { %v788_v33 = vpop.xlane.xlu0 %787 }
 0x786   :  { %v792_v34 = vsub.f32 %v784_v26, %v788_v33  ;;  %v2822_v33 = vld [vmem:[%s3580_s14 + $0x8] sm:$0xff]  }
 0x787   :  { %v791_v35 = vpop.xlane.xlu1 %790 }
 0x788   :  { %v794_v36 = vmul.f32 1.442695, %v792_v34  ;;  %v793_v37 = vsub.f32 %v785_v31, %v791_v35 }
 0x78a   :  { %2853 = vpow2.f32 %v794_v36  ;;  %v796_v38 = vmul.f32 1.442695, %v793_v37 }
 0x78b   :  { %v811_v39 = vpop.permute.xlu1 %810 }
 0x78c   :  { %2855 = vpow2.f32 %v796_v38  ;;  %v816_v40 = vsel %vm587_vm10, %v811_v39, 0 }
 0x78d   :  { %2642 = vmatpush3.bf16.msra.mxu1 %v816_v40 }
 0x78e   :  { %2653 = vmatprep.subr.bf16.mxu1 %v2928_v6 }
 0x794   :  { %v2854_v41 = vpop.eup %2853 }
 0x795   :  { %v798_v42 = vsel %vm557_vm9, %v2854_v41, 0.0 }
 0x796   :  { %v2856_v43 = vpop.eup %2855  ;;  %799 = vadd.xlane.f32.xlu0 %v798_v42 }
 0x797   :  { %v801_v15 = vsel %vm557_vm9, %v2856_v43, 0.0 }
 0x79a   :  { %802 = vadd.xlane.f32.xlu0 %v801_v15 }
 0x7b0   :  { %858 = vrot.lane.b32.xlu0 %v3183_v18, %s2935_s0  ;;  %v2819_v18 = vld [vmem:[%s3576_s10] sm:$0xff]  }
 0x823   :  { %v800_v44 = vpop.xlane.xlu0 %799 }
 0x824   :  { %2857 = vrcp.f32 %v800_v44 }
 0x827   :  { %v803_v45 = vpop.xlane.xlu0 %802 }
 0x828   :  { %2859 = vrcp.f32 %v803_v45  ;;  %v2391_v45 = vld [vmem:[%s3579_s13] ss:$0 sm:$0xff] }
 0x82b   :  { %v859_v46 = vpop.permute.xlu0 %858 }
 0x82c   :  { %v864_v47 = vsel %vm587_vm10, %v859_v46, 0 }
 0x82d   :  { %2648 = vmatpush3.bf16.msra.mxu0 %v864_v47 }
 0x82e   :  { %v2858_v48 = vpop.eup %2857  ;;  %2659 = vmatprep.subr.bf16.mxu0 %v2928_v6 }
 0x82f   :  { %v806_v49 = vmul.f32 %v2858_v48, %v2854_v41  ;;  %v2390_v41 = vld [vmem:[%s3578_s12] ss:$0 sm:$0xff] }
 0x831   :  { %v808_v50 = vpack.c.bf16 %v806_v49, %v806_v49 }
 0x832   :  { %v2860_v51 = vpop.eup %2859 }
 0x833   :  { %v807_v52 = vmul.f32 %v2860_v51, %v2856_v43  ;;  %2644 = vmatmul.mubr.msk.bf16.vlgmr.msra.gmra.mrb[16].mxu1 %vm557_vm9, %v808_v50  ;;  %v2823_v50 = vld [vmem:[%s3582_s16] sm:$0xff]   ;;  %v2824_v51 = vld [vmem:[%s3582_s16 + $0x8] sm:$0xff]  }
 0x834   :  { %2655 = vmatprep.mubr.msk.bf16.mxu1 %vm2929_vm0, %v2928_v6  ;;  %2654 = vmatpush3.bf16.msra.mxu1 %v2820_v54 }
 0x835   :  { %v809_v53 = vpack.c.bf16 %v807_v52, %v807_v52  ;;  %2665 = vmatprep.subr.bf16.mxu1 %v2928_v6  ;;  %v2825_v52 = vld [vmem:[%s3582_s16 + $0x10] sm:$0xff]  }
 0x837   :  { %2650 = vmatmul.mubr.msk.bf16.vlgmr.msra.gmra.mrb[20].mxu0 %vm557_vm9, %v809_v53  ;;  %v2392_v53 = vld [vmem:[%s3581_s15] ss:$0 sm:$0xff] }
 0x838   :  { %2660 = vmatpush3.bf16.msra.mxu0 %v2819_v18  ;;  %2661 = vmatprep.mubr.msk.bf16.mxu0 %vm2929_vm0, %v2928_v6  ;;  %v2826_v18 = vld [vmem:[%s3582_s16 + $0x18] sm:$0xff]  }
 0x839   :  { %2673 = vmatprep.subr.bf16.mxu0 %v2928_v6 }
 0x83f   :  { %2662 = vmatmul.mubr.msk.bf16.vlgmr.msra.gmra.mrb[24].mxu0 %vm445_vm8, %v679_v10 }
 0x840   :  { %2681 = vmatprep.mubr.msk.bf16.mxu0 %vm2929_vm0, %v2928_v6  ;;  %2674 = vmatpush3.bf16.msra.mxu0 %v2823_v50 }
 0x841   :  { %2675 = vmatprep.subr.bf16.mxu0 %v2928_v6 }
 0x844   :  { %2676 = vmatpush3.bf16.msra.mxu0 %v2824_v51 }
 0x845   :  { %2677 = vmatprep.subr.bf16.mxu0 %v2928_v6 }
 0x848   :  { %2678 = vmatpush3.bf16.msra.mxu0 %v2825_v52 }
 0x849   :  { %2679 = vmatprep.subr.bf16.mxu0 %v2928_v6 }
 0x84c   :  { %2680 = vmatpush3.bf16.msra.mxu0 %v2826_v18 }
 0x84d   :  { %2699 = vmatprep.subr.bf16.mxu0 %v2928_v6 }
 0x906   :  { %v852_v55 = vpop.f32.mrb[16].mxu1 }
 0x907   :  { %v2645_v56 = vpop.f32.mrb[17].mxu1 }
 0x908   :  { %v855_v57 = vpop.f32.mrb[18].mxu1 }
 0x909   :  { %v2646_v58 = vpop.f32.mrb[19].mxu1 }
 0x90a   :  { %v900_v59 = vpop.f32.mrb[20].mxu0 }
 0x90b   :  { %v906_v60 = vpack.c.bf16 %v900_v59, %v852_v55  ;;  %v2651_v61 = vpop.f32.mrb[21].mxu0 }
 0x90c   :  { %v903_v62 = vpop.f32.mrb[22].mxu0 }
 0x90d   :  { %v2652_v63 = vpop.f32.mrb[23].mxu0  ;;  %2656 = vmatmul.mubr.msk.bf16.vlgmr.msra.gmra.mrb[20].mxu1 %vm445_vm8, %v906_v60 }
 0x90e   :  { %2669 = vmatprep.mubr.msk.bf16.mxu1 %vm2929_vm0, %v2928_v6 }
 0x912   :  { %v1003_v0 = vpop.f32.mrb[24].mxu0 }
 0x913   :  { %v2663_v1 = vpop.f32.mrb[25].mxu0 }
 0x914   :  { %v1006_v2 = vpop.f32.mrb[26].mxu0 }
 0x915   :  { %v2664_v3 = vpop.f32.mrb[27].mxu0 }
 0x9e0   :  { %v953_v4 = vpop.f32.mrb[20].mxu1 }
 0x9e1   :  { %v1004_v9 = vadd.f32 %v1003_v0, %v953_v4  ;;  %v2657_v10 = vpop.f32.mrb[21].mxu1 }
 0x9e2   :  { %v956_v11 = vpop.f32.mrb[22].mxu1 }
 0x9e3   :  { %v1017_v12 = vadd.f32 %v2389_v5, %v1004_v9  ;;  %v1007_v13 = vadd.f32 %v1006_v2, %v956_v11  ;;  %v2658_v14 = vpop.f32.mrb[23].mxu1 }
 0x9e5   :  { %v1018_v16 = vadd.f32 %v2389_v5, %v1007_v13  ;;  %v1019_v17 = vadd.f32 %v1017_v12, %v3169_v7 }
 0x9e7   :  { %v1023_v19 = vsel %vm328_vm7, %v1019_v17, 0.0  ;;  %v1020_v20 = vadd.f32 %v1018_v16, %v3171_v8  ;;  %v2821_v8 = vld [vmem:[%s3580_s14] sm:$0xff]  }
 0x9e8   :  { %1024 = vadd.xlane.f32.xlu1 %v1023_v19  ;;  %2666 = vmatpush3.bf16.msra.mxu1 %v2821_v8 }
 0x9e9   :  { %v1026_v21 = vsel %vm328_vm7, %v1020_v20, 0.0  ;;  %2667 = vmatprep.subr.bf16.mxu1 %v2928_v6 }
 0x9ea   :  { %1027 = vadd.xlane.f32.xlu0 %v1026_v21 }
 0x9ec   :  { %2668 = vmatpush3.bf16.msra.mxu1 %v2822_v33 }
 0x9ed   :  { %2685 = vmatprep.subr.bf16.mxu1 %v2928_v6 }
 0xa75   :  { %v1025_v22 = vpop.xlane.xlu1 %1024 }
 0xa76   :  { %v1029_v23 = vmul.f32 0.03125, %v1025_v22 }
 0xa77   :  { %v1028_v25 = vpop.xlane.xlu0 %1027 }
 0xa78   :  { %v1031_v26 = vsub.f32 %v1019_v17, %v1029_v23  ;;  %v1030_v27 = vmul.f32 0.03125, %v1028_v25 }
 0xa7a   :  { %v1032_v28 = vsub.f32 %v1020_v20, %v1030_v27  ;;  %v1033_v30 = vmul.f32 %v1031_v26, %v1031_v26  ;;  %v2396_v20 = vld [vmem:[%s3583_s17] ss:$0 sm:$0xff] }
 0xa7c   :  { %v1035_v31 = vsel %vm328_vm7, %v1033_v30, 0.0  ;;  %v1034_v32 = vmul.f32 %v1032_v28, %v1032_v28 }
 0xa7d   :  { %1036 = vadd.xlane.f32.xlu1 %v1035_v31 }
 0xa7e   :  { %v1038_v7 = vsel %vm328_vm7, %v1034_v32, 0.0 }
 0xa7f   :  { %1039 = vadd.xlane.f32.xlu0 %v1038_v7 }
 0xb0a   :  { %v1037_v34 = vpop.xlane.xlu1 %1036 }
 0xb0b   :  { %v1041_v35 = vmul.f32 0.03125, %v1037_v34 }
 0xb0c   :  { %v1040_v36 = vpop.xlane.xlu0 %1039 }
 0xb0d   :  { %v1043_v37 = vadd.f32 1e-12, %v1041_v35  ;;  %v1042_v38 = vmul.f32 0.03125, %v1040_v36 }
 0xb0f   :  { %2861 = vrsqrt.f32 %v1043_v37  ;;  %v1044_v39 = vadd.f32 1e-12, %v1042_v38 }
 0xb11   :  { %2863 = vrsqrt.f32 %v1044_v39 }
 0xb19   :  { %v2862_v40 = vpop.eup %2861 }
 0xb1a   :  { %v1047_v42 = vmul.f32 %v2862_v40, %v1031_v26 }
 0xb1b   :  { %v2864_v43 = vpop.eup %2863 }
 0xb1c   :  { %v1055_v15 = vmul.f32 %v2390_v41, %v1047_v42  ;;  %v1048_v44 = vmul.f32 %v2864_v43, %v1032_v28  ;;  %v2828_v42 = vld [vmem:[%s3613_s27 + $0x18] sm:$0xff]  }
 0xb1e   :  { %v1056_v46 = vmul.f32 %v2390_v41, %v1048_v44  ;;  %v1063_v47 = vadd.f32 %v2391_v45, %v1055_v15  ;;  %v2827_v41 = vld [vmem:[%s3613_s27 + $0x10] sm:$0xff]  }
 0xb20   :  { %v1064_v48 = vadd.f32 %v2391_v45, %v1056_v46 }
 0xb22   :  { %v1065_v49 = vpack.c.bf16 %v1064_v48, %v1063_v47 }
 0xb24   :  { %2670 = vmatmul.mubr.msk.bf16.vlgmr.msra.gmra.mrb[24].mxu1 %vm328_vm7, %v1065_v49  ;;  %v2402_v49 = vld [vmem:[%s3584_s18] ss:$0 sm:$0xff] }
 0xb25   :  { %2689 = vmatprep.mubr.msk.bf16.mxu1 %vm2929_vm0, %v2928_v6  ;;  %2686 = vmatpush3.bf16.msra.mxu1 %v2827_v41 }
 0xb26   :  { %2687 = vmatprep.subr.bf16.mxu1 %v2928_v6 }
 0xb29   :  { %2688 = vmatpush3.bf16.msra.mxu1 %v2828_v42 }
 0xb2a   :  { %2693 = vmatprep.subr.bf16.mxu1 %v2928_v6 }
 0xbf7   :  { %v1126_v54 = vpop.f32.mrb[24].mxu1 }
 0xbf8   :  { %v1127_v55 = vadd.f32 %v2392_v53, %v1126_v54  ;;  %v2671_v56 = vpop.f32.mrb[25].mxu1 }
 0xbf9   :  { %v1129_v57 = vpop.f32.mrb[26].mxu1 }
 0xbfa   :  { %v1135_v58 = vmul.f32 0.044715, %v1127_v55  ;;  %v1130_v59 = vadd.f32 %v2392_v53, %v1129_v57  ;;  %v2672_v60 = vpop.f32.mrb[27].mxu1  ;;  %v1133_v12 = vmul.f32 0.5, %v1127_v55  ;;  %v2403_v53 = vld [vmem:[%s3617_s8] ss:$0 sm:$0xff] }
 0xbfc   :  { %v1137_v61 = vmul.f32 %v1135_v58, %v1127_v55  ;;  %v1136_v62 = vmul.f32 0.044715, %v1130_v59  ;;  %v1134_v13 = vmul.f32 0.5, %v1130_v59  ;;  %v2409_v58 = vld [vmem:[%s3575_s9 + $0x1] ss:$0 sm:$0xff] }
 0xbfe   :  { %v1139_v63 = vmul.f32 %v1137_v61, %v1127_v55  ;;  %v1138_v0 = vmul.f32 %v1136_v62, %v1130_v59 }
 0xc00   :  { %v1141_v1 = vadd.f32 %v1139_v63, %v1127_v55  ;;  %v1140_v2 = vmul.f32 %v1138_v0, %v1130_v59 }
 0xc02   :  { %v1143_v3 = vmul.f32 0.7978846, %v1141_v1  ;;  %v1142_v4 = vadd.f32 %v1140_v2, %v1130_v59 }
 0xc04   :  { %2865 = vtanh.f32 %v1143_v3  ;;  %v1144_v5 = vmul.f32 0.7978846, %v1142_v4 }
 0xc06   :  { %2867 = vtanh.f32 %v1144_v5 }
 0xc0e   :  { %v2866_v9 = vpop.eup %2865 }
 0xc0f   :  { %v1147_v10 = vadd.f32 1.0, %v2866_v9 }
 0xc10   :  { %v2868_v11 = vpop.eup %2867 }
 0xc11   :  { %v1148_v14 = vadd.f32 1.0, %v2868_v11  ;;  %v1149_v16 = vmul.f32 %v1147_v10, %v1133_v12 }
 0xc13   :  { %v1150_v17 = vmul.f32 %v1148_v14, %v1134_v13 }
 0xc15   :  { %v1151_v19 = vpack.c.bf16 %v1150_v17, %v1149_v16 }
 0xc17   :  { %2682 = vmatmul.mubr.msk.bf16.vlgmr.msra.gmra.mrb[28].mxu0 %vm1191_vm11, %v1151_v19 }
 0xc18   :  { %2701 = vmatprep.mubr.msk.bf16.mxu0 %vm2929_vm0, %v2928_v6 }
 0xcea   :  { %v1229_v21 = vpop.f32.mrb[28].mxu0 }
 0xceb   :  { %v1230_v22 = vadd.f32 %v2396_v20, %v1229_v21  ;;  %v2683_v23 = vpop.f32.mrb[29].mxu0 }
 0xcec   :  { %v1232_v25 = vpop.f32.mrb[30].mxu0 }
 0xced   :  { %v1233_v26 = vadd.f32 %v2396_v20, %v1232_v25  ;;  %v2684_v27 = vpop.f32.mrb[31].mxu0  ;;  %v1236_v28 = vadd.f32 %v1230_v22, %v1063_v47 }
 0xcef   :  { %v1240_v30 = vsel %vm328_vm7, %v1236_v28, 0.0  ;;  %v1237_v31 = vadd.f32 %v1233_v26, %v1064_v48 }
 0xcf0   :  { %1241 = vadd.xlane.f32.xlu1 %v1240_v30 }
 0xcf1   :  { %v1243_v32 = vsel %vm328_vm7, %v1237_v31, 0.0 }
 0xcf2   :  { %1244 = vadd.xlane.f32.xlu0 %v1243_v32 }
 0xd7d   :  { %v1242_v7 = vpop.xlane.xlu1 %1241 }
 0xd7e   :  { %v1246_v8 = vmul.f32 0.03125, %v1242_v7 }
 0xd7f   :  { %v1245_v33 = vpop.xlane.xlu0 %1244 }
 0xd80   :  { %v1248_v34 = vsub.f32 %v1236_v28, %v1246_v8  ;;  %v1247_v35 = vmul.f32 0.03125, %v1245_v33 }
 0xd82   :  { %v1249_v36 = vsub.f32 %v1237_v31, %v1247_v35  ;;  %v1250_v37 = vmul.f32 %v1248_v34, %v1248_v34 }
 0xd84   :  { %v1252_v38 = vsel %vm328_vm7, %v1250_v37, 0.0  ;;  %v1251_v39 = vmul.f32 %v1249_v36, %v1249_v36 }
 0xd85   :  { %1253 = vadd.xlane.f32.xlu1 %v1252_v38 }
 0xd86   :  { %v1255_v40 = vsel %vm328_vm7, %v1251_v39, 0.0 }
 0xd87   :  { %1256 = vadd.xlane.f32.xlu0 %v1255_v40 }
 0xe12   :  { %v1254_v43 = vpop.xlane.xlu1 %1253 }
 0xe13   :  { %v1258_v15 = vmul.f32 0.03125, %v1254_v43 }
 0xe14   :  { %v1257_v44 = vpop.xlane.xlu0 %1256 }
 0xe15   :  { %v1260_v45 = vadd.f32 1e-12, %v1258_v15  ;;  %v1259_v46 = vmul.f32 0.03125, %v1257_v44 }
 0xe17   :  { %2869 = vrsqrt.f32 %v1260_v45  ;;  %v1261_v47 = vadd.f32 1e-12, %v1259_v46 }
 0xe19   :  { %2871 = vrsqrt.f32 %v1261_v47 }
 0xe21   :  { %v2870_v48 = vpop.eup %2869 }
 0xe22   :  { %v1264_v50 = vmul.f32 %v2870_v48, %v1248_v34 }
 0xe23   :  { %v2872_v51 = vpop.eup %2871 }
 0xe24   :  { %v1272_v52 = vmul.f32 %v2402_v49, %v1264_v50  ;;  %v1265_v18 = vmul.f32 %v2872_v51, %v1249_v36 }
 0xe26   :  { %v1273_v54 = vmul.f32 %v2402_v49, %v1265_v18  ;;  %v3361_v55 = vadd.f32 %v2403_v53, %v1272_v52 }
 0xe28   :  { %v3363_v56 = vadd.f32 %v2403_v53, %v1273_v54 }
 0xe2a   :  { %v1282_v57 = vpack.c.bf16 %v3363_v56, %v3361_v55 }
 0xe2c   :  { %2690 = vmatmul.mubr.msk.bf16.vlgmr.msra.gmra.mrb[28].mxu1 %vm328_vm7, %v1282_v57 }
 0xe2d   :  { %2695 = vmatprep.mubr.msk.bf16.mxu1 %vm2929_vm0, %v2928_v6 }
 0xeff   :  { %v1345_v59 = vpop.f32.mrb[28].mxu1 }
 0xf00   :  { %v1346_v60 = vadd.f32 %v2409_v58, %v1345_v59  ;;  %v2691_v61 = vpop.f32.mrb[29].mxu1 }
 0xf01   :  { %v1348_v62 = vpop.f32.mrb[30].mxu1 }
 0xf02   :  { %v3373_v63 = vpack.c.bf16 %v1346_v60, %v1346_v60  ;;  %v1349_v0 = vadd.f32 %v2409_v58, %v1348_v62  ;;  %v2692_v1 = vpop.f32.mrb[31].mxu1 }
 0xf04   :  { %v3375_v2 = vpack.c.bf16 %v1349_v0, %v1349_v0  ;;  %1355 = vrot.lane.b32.xlu1 %v3373_v63, %s2931_s25 }
 0xf06   :  { %1404 = vrot.lane.b32.xlu0 %v3375_v2, %s2931_s25 }
 0xf76   :  { %v1356_v3 = vpop.permute.xlu1 %1355 }
 0xf77   :  { %v1361_v4 = vsel %vm445_vm8, %v1356_v3, 0 }
 0xf78   :  { %2694 = vmatpush3.bf16.xpose.msra.mxu1 %v1361_v4  ;;  %v1405_v5 = vpop.permute.xlu0 %1404 }
 0xf79   :  { %v1410_v9 = vsel %vm445_vm8, %v1405_v5, 0  ;;  %2705 = vmatprep.subr.bf16.mxu1 %v2928_v6 }
 0xf7a   :  { %2700 = vmatpush3.bf16.xpose.msra.mxu0 %v1410_v9 }
 0xf7b   :  { %2711 = vmatprep.subr.bf16.mxu0 %v2928_v6 }
 0xf7f   :  { %2696 = vmatmul.mubr.msk.bf16.vlgmr.msra.gmra.mrb[32].mxu1 %vm445_vm8, %v3373_v63 }
 0xf80   :  { %2707 = vmatprep.mubr.msk.bf16.mxu1 %vm2929_vm0, %v2928_v6 }
 0xf81   :  { %2702 = vmatmul.mubr.msk.bf16.vlgmr.msra.gmra.mrb[32].mxu0 %vm445_vm8, %v3375_v2 }
 0xf82   :  { %2713 = vmatprep.mubr.msk.bf16.mxu0 %vm2929_vm0, %v2928_v6 }
0x1052   :  { %v1397_v10 = vpop.f32.mrb[32].mxu1 }
0x1053   :  { %v1452_v11 = vmul.f32 0.25, %v1397_v10  ;;  %v2697_v12 = vpop.f32.mrb[33].mxu1 }
0x1054   :  { %v1400_v13 = vpop.f32.mrb[34].mxu1  ;;  %v1446_v14 = vpop.f32.mrb[32].mxu0 }
0x1055   :  { %v1453_v16 = vmul.f32 0.25, %v1446_v14  ;;  %v2698_v17 = vpop.f32.mrb[35].mxu1  ;;  %v2703_v19 = vpop.f32.mrb[33].mxu0  ;;  %v1454_v20 = vadd.f32 %v3204_v24, %v1452_v11 }
0x1056   :  { %v1449_v21 = vpop.f32.mrb[34].mxu0 }
0x1057   :  { %v2704_v22 = vpop.f32.mrb[35].mxu0  ;;  %v1456_v23 = vsel %vm557_vm9, %v1454_v20, -inf  ;;  %v1455_v25 = vadd.f32 %v3209_v29, %v1453_v16 }
0x1058   :  { %1457 = vmax.xlane.f32.xlu1 %v1456_v23 }
0x1059   :  { %v1459_v26 = vsel %vm557_vm9, %v1455_v25, -inf }
0x105a   :  { %1460 = vmax.xlane.f32.xlu0 %v1459_v26 }
0x1069   :  { %1480 = vrot.lane.b32.xlu1 %v3373_v63, %s2932_s6 }
0x10e5   :  { %v1458_v27 = vpop.xlane.xlu1 %1457 }
0x10e6   :  { %v1462_v28 = vsub.f32 %v1454_v20, %v1458_v27 }
0x10e7   :  { %v1461_v30 = vpop.xlane.xlu0 %1460 }
0x10e8   :  { %v1464_v31 = vmul.f32 1.442695, %v1462_v28  ;;  %v1463_v32 = vsub.f32 %v1455_v25, %v1461_v30 }
0x10e9   :  { %v1481_v7 = vpop.permute.xlu1 %1480 }
0x10ea   :  { %2873 = vpow2.f32 %v1464_v31  ;;  %v1466_v8 = vmul.f32 1.442695, %v1463_v32  ;;  %v1486_v33 = vsel %vm587_vm10, %v1481_v7, 0 }
0x10eb   :  { %2706 = vmatpush3.bf16.msra.mxu1 %v1486_v33 }
0x10ec   :  { %2875 = vpow2.f32 %v1466_v8  ;;  %2717 = vmatprep.subr.bf16.mxu1 %v2928_v6 }
0x10f4   :  { %v2874_v34 = vpop.eup %2873 }
0x10f5   :  { %v1468_v35 = vsel %vm557_vm9, %v2874_v34, 0.0 }
0x10f6   :  { %v2876_v36 = vpop.eup %2875  ;;  %1469 = vadd.xlane.f32.xlu1 %v1468_v35 }
0x10f7   :  { %v1471_v37 = vsel %vm557_vm9, %v2876_v36, 0.0 }
0x10f8   :  { %1472 = vadd.xlane.f32.xlu0 %v1471_v37 }
0x1107   :  { %1582 = vrot.lane.b32.xlu1 %v3373_v63, %s2933_s2 }
0x110b   :  { %1632 = vrot.lane.b32.xlu1 %v3375_v2, %s2933_s2 }
0x110e   :  { %1528 = vrot.lane.b32.xlu0 %v3375_v2, %s2932_s6 }
0x110f   :  { %1630 = vrot.lane.b32.xlu1 %v3375_v2, %s2934_s29 }
0x1112   :  { %1580 = vrot.lane.b32.xlu0 %v3373_v63, %s2934_s29 }
0x1183   :  { %v1470_v38 = vpop.xlane.xlu1 %1469 }
0x1184   :  { %2877 = vrcp.f32 %v1470_v38 }
0x1185   :  { %v1473_v39 = vpop.xlane.xlu0 %1472 }
0x1186   :  { %2879 = vrcp.f32 %v1473_v39  ;;  %v2830_v39 = vld [vmem:[%s3576_s10 + $0x18] sm:$0xff]  }
0x1187   :  { %v1583_v42 = vpop.permute.xlu1 %1582 }
0x1188   :  { %v1588_v48 = vsel %vm445_vm8, %v1583_v42, 0 }
0x1189   :  { %v1529_v40 = vpop.permute.xlu0 %1528 }
0x118a   :  { %v1534_v41 = vsel %vm587_vm10, %v1529_v40, 0 }
0x118b   :  { %2712 = vmatpush3.bf16.msra.mxu0 %v1534_v41  ;;  %v1633_v47 = vpop.permute.xlu1 %1632 }
0x118c   :  { %2723 = vmatprep.subr.bf16.mxu0 %v2928_v6  ;;  %v1638_v50 = vsel %vm445_vm8, %v1633_v47, 0 }
0x118d   :  { %v1581_v51 = vpop.permute.xlu0 %1580 }
0x118e   :  { %v2878_v43 = vpop.eup %2877 }
0x118f   :  { %v1476_v15 = vmul.f32 %v2878_v43, %v2874_v34  ;;  %v1631_v52 = vpop.permute.xlu1 %1630 }
0x1190   :  { %v2880_v44 = vpop.eup %2879 }
0x1191   :  { %v1477_v45 = vmul.f32 %v2880_v44, %v2876_v36  ;;  %v1478_v46 = vpack.c.bf16 %v1476_v15, %v1476_v15 }
0x1193   :  { %2708 = vmatmul.mubr.msk.bf16.vlgmr.msra.gmra.mrb[36].mxu1 %vm557_vm9, %v1478_v46  ;;  %v1479_v49 = vpack.c.bf16 %v1477_v45, %v1477_v45 }
0x1194   :  { %2718 = vmatpush3.bf16.xpose.msra.mxu1 %v1588_v48  ;;  %2719 = vmatprep.mubr.msk.bf16.mxu1 %vm2929_vm0, %v2928_v6 }
0x1195   :  { %2714 = vmatmul.mubr.msk.bf16.vlgmr.msra.gmra.mrb[36].mxu0 %vm557_vm9, %v1479_v49  ;;  %2729 = vmatprep.subr.bf16.mxu1 %v2928_v6 }
0x1196   :  { %2724 = vmatpush3.bf16.xpose.msra.mxu0 %v1638_v50  ;;  %2725 = vmatprep.mubr.msk.bf16.mxu0 %vm2929_vm0, %v2928_v6 }
0x1197   :  { %2735 = vmatprep.subr.bf16.mxu0 %v2928_v6 }
0x119b   :  { %2720 = vmatmul.mubr.msk.bf16.vlgmr.msra.gmra.mrb[40].mxu1 %vm445_vm8, %v1581_v51 }
0x119c   :  { %2731 = vmatprep.mubr.msk.bf16.mxu1 %vm2929_vm0, %v2928_v6 }
0x119d   :  { %2726 = vmatmul.mubr.msk.bf16.vlgmr.msra.gmra.mrb[40].mxu0 %vm445_vm8, %v1631_v52 }
0x119e   :  { %2737 = vmatprep.mubr.msk.bf16.mxu0 %vm2929_vm0, %v2928_v6 }
0x1266   :  { %v3431_v18 = vpop.f32.mrb[36].mxu1 }
0x1267   :  { %v2709_v53 = vpop.f32.mrb[37].mxu1 }
0x1268   :  { %v1525_v54 = vpop.f32.mrb[38].mxu1  ;;  %v3433_v57 = vpop.f32.mrb[36].mxu0 }
0x1269   :  { %v1576_v58 = vpack.c.bf16 %v3433_v57, %v3431_v18  ;;  %v2710_v59 = vpop.f32.mrb[39].mxu1  ;;  %v2715_v60 = vpop.f32.mrb[37].mxu0  ;;  %v2430_v18 = vld [vmem:[%s3577_s11 + $0x1] ss:$0 sm:$0xff] }
0x126a   :  { %v1573_v61 = vpop.f32.mrb[38].mxu0 }
0x126b   :  { %v2716_v62 = vpop.f32.mrb[39].mxu0 }
0x126e   :  { %v1624_v0 = vpop.f32.mrb[40].mxu1 }
0x126f   :  { %v1680_v1 = vmul.f32 0.25, %v1624_v0  ;;  %v2721_v3 = vpop.f32.mrb[41].mxu1 }
0x1270   :  { %v1627_v4 = vpop.f32.mrb[42].mxu1  ;;  %v1674_v5 = vpop.f32.mrb[40].mxu0 }
0x1271   :  { %v1681_v9 = vmul.f32 0.25, %v1674_v5  ;;  %v2722_v10 = vpop.f32.mrb[43].mxu1  ;;  %v2727_v11 = vpop.f32.mrb[41].mxu0  ;;  %v1682_v12 = vadd.f32 %v3204_v24, %v1680_v1 }
0x1272   :  { %v1677_v13 = vpop.f32.mrb[42].mxu0 }
0x1273   :  { %v2728_v14 = vpop.f32.mrb[43].mxu0  ;;  %v1684_v16 = vsel %vm557_vm9, %v1682_v12, -inf  ;;  %v1683_v17 = vadd.f32 %v3209_v29, %v1681_v9 }
0x1274   :  { %1685 = vmax.xlane.f32.xlu0 %v1684_v16 }
0x1275   :  { %v1687_v19 = vsel %vm557_vm9, %v1683_v17, -inf }
0x1276   :  { %1688 = vmax.xlane.f32.xlu1 %v1687_v19 }
0x1287   :  { %1708 = vrot.lane.b32.xlu1 %v3373_v63, %s2935_s0 }
0x1301   :  { %v1686_v20 = vpop.xlane.xlu0 %1685 }
0x1302   :  { %v1690_v21 = vsub.f32 %v1682_v12, %v1686_v20 }
0x1303   :  { %v1689_v22 = vpop.xlane.xlu1 %1688 }
0x1304   :  { %v1692_v23 = vmul.f32 1.442695, %v1690_v21  ;;  %v1691_v25 = vsub.f32 %v1683_v17, %v1689_v22  ;;  %v2832_v17 = vld [vmem:[%s3580_s14 + $0x18] sm:$0xff]  }
0x1306   :  { %2881 = vpow2.f32 %v1692_v23  ;;  %v1694_v24 = vmul.f32 1.442695, %v1691_v25 }
0x1307   :  { %v1709_v26 = vpop.permute.xlu1 %1708 }
0x1308   :  { %2883 = vpow2.f32 %v1694_v24  ;;  %v1714_v27 = vsel %vm587_vm10, %v1709_v26, 0  ;;  %v2433_v26 = vld [vmem:[%s3578_s12 + $0x1] ss:$0 sm:$0xff] }
0x1309   :  { %2730 = vmatpush3.bf16.msra.mxu1 %v1714_v27 }
0x130a   :  { %2741 = vmatprep.subr.bf16.mxu1 %v2928_v6 }
0x1310   :  { %v2882_v29 = vpop.eup %2881 }
0x1311   :  { %v1696_v28 = vsel %vm557_vm9, %v2882_v29, 0.0 }
0x1312   :  { %v2884_v30 = vpop.eup %2883  ;;  %1697 = vadd.xlane.f32.xlu0 %v1696_v28 }
0x1313   :  { %v1699_v63 = vsel %vm557_vm9, %v2884_v30, 0.0 }
0x1316   :  { %1700 = vadd.xlane.f32.xlu0 %v1699_v63  ;;  %v2434_v63 = vld [vmem:[%s3579_s13 + $0x1] ss:$0 sm:$0xff] }
0x132c   :  { %1756 = vrot.lane.b32.xlu0 %v3375_v2, %s2935_s0  ;;  %v2829_v2 = vld [vmem:[%s3576_s10 + $0x10] sm:$0xff]  }
0x139f   :  { %v1698_v31 = vpop.xlane.xlu0 %1697 }
0x13a0   :  { %2885 = vrcp.f32 %v1698_v31 }
0x13a3   :  { %v1701_v32 = vpop.xlane.xlu0 %1700 }
0x13a4   :  { %2887 = vrcp.f32 %v1701_v32 }
0x13a7   :  { %v1757_v7 = vpop.permute.xlu0 %1756 }
0x13a8   :  { %v1762_v8 = vsel %vm587_vm10, %v1757_v7, 0 }
0x13a9   :  { %2736 = vmatpush3.bf16.msra.mxu0 %v1762_v8 }
0x13aa   :  { %v2886_v33 = vpop.eup %2885  ;;  %2747 = vmatprep.subr.bf16.mxu0 %v2928_v6 }
0x13ab   :  { %v1704_v34 = vmul.f32 %v2886_v33, %v2882_v29  ;;  %v2833_v33 = vld [vmem:[%s3582_s16 + $0x20] sm:$0xff]  }
0x13ad   :  { %v1706_v35 = vpack.c.bf16 %v1704_v34, %v1704_v34  ;;  %v2834_v34 = vld [vmem:[%s3582_s16 + $0x28] sm:$0xff]  }
0x13ae   :  { %v2888_v36 = vpop.eup %2887 }
0x13af   :  { %v1705_v37 = vmul.f32 %v2888_v36, %v2884_v30  ;;  %2732 = vmatmul.mubr.msk.bf16.vlgmr.msra.gmra.mrb[44].mxu1 %vm557_vm9, %v1706_v35  ;;  %v2835_v35 = vld [vmem:[%s3582_s16 + $0x30] sm:$0xff]   ;;  %v2836_v36 = vld [vmem:[%s3582_s16 + $0x38] sm:$0xff]  }
0x13b0   :  { %2743 = vmatprep.mubr.msk.bf16.mxu1 %vm2929_vm0, %v2928_v6  ;;  %2742 = vmatpush3.bf16.msra.mxu1 %v2830_v39 }
0x13b1   :  { %v1707_v38 = vpack.c.bf16 %v1705_v37, %v1705_v37  ;;  %2753 = vmatprep.subr.bf16.mxu1 %v2928_v6  ;;  %v2440_v37 = vld [vmem:[%s3581_s15 + $0x1] ss:$0 sm:$0xff] }
0x13b3   :  { %2738 = vmatmul.mubr.msk.bf16.vlgmr.msra.gmra.mrb[44].mxu0 %vm557_vm9, %v1707_v38 }
0x13b4   :  { %2748 = vmatpush3.bf16.msra.mxu0 %v2829_v2  ;;  %2749 = vmatprep.mubr.msk.bf16.mxu0 %vm2929_vm0, %v2928_v6 }
0x13b5   :  { %2761 = vmatprep.subr.bf16.mxu0 %v2928_v6 }
0x13bb   :  { %2750 = vmatmul.mubr.msk.bf16.vlgmr.msra.gmra.mrb[48].mxu0 %vm445_vm8, %v1576_v58 }
0x13bc   :  { %2769 = vmatprep.mubr.msk.bf16.mxu0 %vm2929_vm0, %v2928_v6  ;;  %2762 = vmatpush3.bf16.msra.mxu0 %v2833_v33 }
0x13bd   :  { %2763 = vmatprep.subr.bf16.mxu0 %v2928_v6 }
0x13c0   :  { %2764 = vmatpush3.bf16.msra.mxu0 %v2834_v34 }
0x13c1   :  { %2765 = vmatprep.subr.bf16.mxu0 %v2928_v6 }
0x13c4   :  { %2766 = vmatpush3.bf16.msra.mxu0 %v2835_v35 }
0x13c5   :  { %2767 = vmatprep.subr.bf16.mxu0 %v2928_v6 }
0x13c8   :  { %2768 = vmatpush3.bf16.msra.mxu0 %v2836_v36  ;;  %v2462_v36 = vld [vmem:[%s3617_s8 + $0x1] ss:$0 sm:$0xff] }
0x1482   :  { %v1750_v40 = vpop.f32.mrb[44].mxu1 }
0x1483   :  { %v2733_v41 = vpop.f32.mrb[45].mxu1 }
0x1484   :  { %v1753_v42 = vpop.f32.mrb[46].mxu1 }
0x1485   :  { %v2734_v43 = vpop.f32.mrb[47].mxu1 }
0x1486   :  { %v1798_v15 = vpop.f32.mrb[44].mxu0 }
0x1487   :  { %v1804_v44 = vpack.c.bf16 %v1798_v15, %v1750_v40  ;;  %v2739_v45 = vpop.f32.mrb[45].mxu0 }
0x1488   :  { %v1801_v46 = vpop.f32.mrb[46].mxu0 }
0x1489   :  { %v2740_v47 = vpop.f32.mrb[47].mxu0  ;;  %2744 = vmatmul.mubr.msk.bf16.vlgmr.msra.gmra.mrb[48].mxu1 %vm445_vm8, %v1804_v44 }
0x148a   :  { %2757 = vmatprep.mubr.msk.bf16.mxu1 %vm2929_vm0, %v2928_v6 }
0x148e   :  { %v1901_v48 = vpop.f32.mrb[48].mxu0 }
0x148f   :  { %v2751_v49 = vpop.f32.mrb[49].mxu0 }
0x1490   :  { %v1904_v50 = vpop.f32.mrb[50].mxu0 }
0x1491   :  { %v2752_v51 = vpop.f32.mrb[51].mxu0 }
0x155c   :  { %v1851_v52 = vpop.f32.mrb[48].mxu1 }
0x155d   :  { %v1902_v53 = vadd.f32 %v1901_v48, %v1851_v52  ;;  %v2745_v54 = vpop.f32.mrb[49].mxu1 }
0x155e   :  { %v1854_v57 = vpop.f32.mrb[50].mxu1 }
0x155f   :  { %v1916_v58 = vadd.f32 %v2430_v18, %v1902_v53  ;;  %v1905_v59 = vadd.f32 %v1904_v50, %v1854_v57  ;;  %v2746_v60 = vpop.f32.mrb[51].mxu1 }
0x1561   :  { %v1917_v61 = vadd.f32 %v2430_v18, %v1905_v59  ;;  %v1918_v62 = vadd.f32 %v1916_v58, %v3361_v55 }
0x1563   :  { %v1924_v0 = vsel %vm328_vm7, %v1918_v62, 0.0  ;;  %v1919_v1 = vadd.f32 %v1917_v61, %v3363_v56  ;;  %v2831_v56 = vld [vmem:[%s3580_s14 + $0x10] sm:$0xff]  }
0x1564   :  { %1925 = vadd.xlane.f32.xlu1 %v1924_v0  ;;  %2754 = vmatpush3.bf16.msra.mxu1 %v2831_v56 }
0x1565   :  { %v1927_v3 = vsel %vm328_vm7, %v1919_v1, 0.0  ;;  %2755 = vmatprep.subr.bf16.mxu1 %v2928_v6 }
0x1566   :  { %1928 = vadd.xlane.f32.xlu0 %v1927_v3 }
0x1568   :  { %2756 = vmatpush3.bf16.msra.mxu1 %v2832_v17 }
0x1569   :  { %2773 = vmatprep.subr.bf16.mxu1 %v2928_v6 }
0x15f1   :  { %v1926_v4 = vpop.xlane.xlu1 %1925 }
0x15f2   :  { %v1930_v5 = vmul.f32 0.03125, %v1926_v4 }
0x15f3   :  { %v1929_v9 = vpop.xlane.xlu0 %1928 }
0x15f4   :  { %v1932_v10 = vsub.f32 %v1918_v62, %v1930_v5  ;;  %v1931_v11 = vmul.f32 0.03125, %v1929_v9  ;;  %v2453_v62 = vld [vmem:[%s3583_s17 + $0x1] ss:$0 sm:$0xff] }
0x15f6   :  { %v1933_v12 = vsub.f32 %v1919_v1, %v1931_v11  ;;  %v1934_v13 = vmul.f32 %v1932_v10, %v1932_v10 }
0x15f8   :  { %v1936_v14 = vsel %vm328_vm7, %v1934_v13, 0.0  ;;  %v1935_v16 = vmul.f32 %v1933_v12, %v1933_v12 }
0x15f9   :  { %1937 = vadd.xlane.f32.xlu1 %v1936_v14 }
0x15fa   :  { %v1939_v55 = vsel %vm328_vm7, %v1935_v16, 0.0 }
0x15fb   :  { %1940 = vadd.xlane.f32.xlu0 %v1939_v55 }
0x1686   :  { %v1938_v19 = vpop.xlane.xlu1 %1937 }
0x1687   :  { %v1942_v20 = vmul.f32 0.03125, %v1938_v19 }
0x1688   :  { %v1941_v21 = vpop.xlane.xlu0 %1940 }
0x1689   :  { %v1944_v22 = vadd.f32 1e-12, %v1942_v20  ;;  %v1943_v23 = vmul.f32 0.03125, %v1941_v21 }
0x168b   :  { %2889 = vrsqrt.f32 %v1944_v22  ;;  %v1945_v25 = vadd.f32 1e-12, %v1943_v23 }
0x168d   :  { %2891 = vrsqrt.f32 %v1945_v25  ;;  %v2837_v25 = vld [vmem:[%s3586_s20] sm:$0xff]  }
0x1695   :  { %v2890_v24 = vpop.eup %2889 }
0x1696   :  { %v1948_v27 = vmul.f32 %v2890_v24, %v1932_v10  ;;  %v2838_v24 = vld [vmem:[%s3586_s20 + $0x8] sm:$0xff]  }
0x1697   :  { %v2892_v29 = vpop.eup %2891 }
0x1698   :  { %v1956_v28 = vmul.f32 %v2433_v26, %v1948_v27  ;;  %v1949_v30 = vmul.f32 %v2892_v29, %v1933_v12 }
0x169a   :  { %v1957_v31 = vmul.f32 %v2433_v26, %v1949_v30  ;;  %v1964_v32 = vadd.f32 %v2434_v63, %v1956_v28 }
0x169c   :  { %v1965_v7 = vadd.f32 %v2434_v63, %v1957_v31 }
0x169e   :  { %v1966_v8 = vpack.c.bf16 %v1965_v7, %v1964_v32 }
0x16a0   :  { %2758 = vmatmul.mubr.msk.bf16.vlgmr.msra.gmra.mrb[52].mxu1 %vm328_vm7, %v1966_v8  ;;  %v2461_v8 = vld [vmem:[%s3584_s18 + $0x1] ss:$0 sm:$0xff] }
0x16a1   :  { %2777 = vmatprep.mubr.msk.bf16.mxu1 %vm2929_vm0, %v2928_v6  ;;  %2774 = vmatpush3.bf16.msra.mxu1 %v2837_v25 }
0x16a2   :  { %2775 = vmatprep.subr.bf16.mxu1 %v2928_v6 }
0x16a5   :  { %2776 = vmatpush3.bf16.msra.mxu1 %v2838_v24 }
0x16a6   :  { %2781 = vmatprep.subr.bf16.mxu1 %v2928_v6 }
0x1773   :  { %v2029_v2 = vpop.f32.mrb[52].mxu1 }
0x1774   :  { %v2030_v38 = vadd.f32 %v2440_v37, %v2029_v2  ;;  %v2759_v39 = vpop.f32.mrb[53].mxu1 }
0x1775   :  { %v2032_v40 = vpop.f32.mrb[54].mxu1 }
0x1776   :  { %v2038_v41 = vmul.f32 0.044715, %v2030_v38  ;;  %v2033_v42 = vadd.f32 %v2440_v37, %v2032_v40  ;;  %v2760_v43 = vpop.f32.mrb[55].mxu1  ;;  %v2036_v54 = vmul.f32 0.5, %v2030_v38 }
0x1777   :  { %v2463_v43 = vld [vmem:[%s3587_s21] ss:$0 sm:$0xff] }
0x1778   :  { %v2040_v15 = vmul.f32 %v2038_v41, %v2030_v38  ;;  %v2039_v44 = vmul.f32 0.044715, %v2033_v42  ;;  %v2037_v57 = vmul.f32 0.5, %v2033_v42  ;;  %v2839_v41 = vld [vmem:[%s3588_s22] sm:$0xff]  }
0x177a   :  { %v2042_v45 = vmul.f32 %v2040_v15, %v2030_v38  ;;  %v2041_v46 = vmul.f32 %v2039_v44, %v2033_v42 }
0x177c   :  { %v2044_v47 = vadd.f32 %v2042_v45, %v2030_v38  ;;  %v2043_v48 = vmul.f32 %v2041_v46, %v2033_v42 }
0x177e   :  { %v2046_v49 = vmul.f32 0.7978846, %v2044_v47  ;;  %v2045_v50 = vadd.f32 %v2043_v48, %v2033_v42  ;;  %v2840_v42 = vld [vmem:[%s3588_s22 + $0x8] sm:$0xff]   ;;  %s2936_s22 = smov [#allocation2]  }
0x177f   :  { %s2335_s27 = sshll.u32 %s2936_s22, 4  ;;  %s2336_s27 = int_to_ptr.vmem [resolvable:$true] %s2335_s27 }
0x1780   :  { %2893 = vtanh.f32 %v2046_v49  ;;  %v2047_v51 = vmul.f32 0.7978846, %v2045_v50  ;;  %s2903_s21 = scalar_lea.vmem %s2336_s27, 32  ;;  %p2908_p1 = scmp.lt.s32.totalorder %s2336_s27, %s2336_s27 }
0x1781   :  { %p2904_p0 = scmp.ne.s32.totalorder %s2336_s27, %s2903_s21  ;;  %p2909_p2 = scmp.lt.s32.totalorder %s2903_s21, %s2903_s21 }
0x1782   :  { %2895 = vtanh.f32 %v2047_v51 }
0x1783   :  { %p2910_p3 = por %p2909_p2, %p2908_p1 }
0x1785   :  { %p2911_p4 = pnand %p2910_p3, %p2904_p0 }
0x178a   :  { %v2894_v52 = vpop.eup %2893 }
0x178b   :  { %v2050_v18 = vadd.f32 1.0, %v2894_v52 }
0x178c   :  { %v2896_v53 = vpop.eup %2895 }
0x178d   :  { %v2051_v58 = vadd.f32 1.0, %v2896_v53  ;;  %v2052_v59 = vmul.f32 %v2050_v18, %v2036_v54 }
0x178f   :  { %v2053_v60 = vmul.f32 %v2051_v58, %v2037_v57 }
0x1791   :  { %v2054_v61 = vpack.c.bf16 %v2053_v60, %v2052_v59 }
0x1793   :  { %2770 = vmatmul.mubr.msk.bf16.vlgmr.msra.gmra.mrb[52].mxu0 %vm1191_vm11, %v2054_v61 }
0x1866   :  { %v2133_v0 = vpop.f32.mrb[52].mxu0 }
0x1867   :  { %v2134_v1 = vadd.f32 %v2453_v62, %v2133_v0  ;;  %v2771_v3 = vpop.f32.mrb[53].mxu0 }
0x1868   :  { %v2136_v4 = vpop.f32.mrb[54].mxu0 }
0x1869   :  { %v2137_v5 = vadd.f32 %v2453_v62, %v2136_v4  ;;  %v2772_v9 = vpop.f32.mrb[55].mxu0  ;;  %v2140_v10 = vadd.f32 %v2134_v1, %v1964_v32 }
0x186b   :  { %v2146_v11 = vsel %vm328_vm7, %v2140_v10, 0.0  ;;  %v2141_v12 = vadd.f32 %v2137_v5, %v1965_v7 }
0x186c   :  { %2147 = vadd.xlane.f32.xlu0 %v2146_v11 }
0x186d   :  { %v2149_v13 = vsel %vm328_vm7, %v2141_v12, 0.0 }
0x186e   :  { %2150 = vadd.xlane.f32.xlu1 %v2149_v13 }
0x18f9   :  { %v2148_v14 = vpop.xlane.xlu0 %2147 }
0x18fa   :  { %v2152_v16 = vmul.f32 0.03125, %v2148_v14 }
0x18fb   :  { %v2151_v55 = vpop.xlane.xlu1 %2150 }
0x18fc   :  { %v2154_v56 = vsub.f32 %v2140_v10, %v2152_v16  ;;  %v2153_v17 = vmul.f32 0.03125, %v2151_v55 }
0x18fe   :  { %v2155_v19 = vsub.f32 %v2141_v12, %v2153_v17  ;;  %v2156_v20 = vmul.f32 %v2154_v56, %v2154_v56 }
0x1900   :  { %v2158_v21 = vsel %vm328_vm7, %v2156_v20, 0.0  ;;  %v2157_v22 = vmul.f32 %v2155_v19, %v2155_v19 }
0x1901   :  { %2159 = vadd.xlane.f32.xlu0 %v2158_v21 }
0x1902   :  { %v2161_v23 = vsel %vm328_vm7, %v2157_v22, 0.0 }
0x1903   :  { %2162 = vadd.xlane.f32.xlu1 %v2161_v23 }
0x198e   :  { %v2160_v26 = vpop.xlane.xlu0 %2159 }
0x198f   :  { %v2164_v27 = vmul.f32 0.03125, %v2160_v26 }
0x1990   :  { %v2163_v29 = vpop.xlane.xlu1 %2162 }
0x1991   :  { %v2166_v28 = vadd.f32 1e-12, %v2164_v27  ;;  %v2165_v30 = vmul.f32 0.03125, %v2163_v29 }
0x1993   :  { %2897 = vrsqrt.f32 %v2166_v28  ;;  %v2167_v63 = vadd.f32 1e-12, %v2165_v30 }
0x1995   :  { %2899 = vrsqrt.f32 %v2167_v63 }
0x199d   :  { %v2898_v31 = vpop.eup %2897 }
0x199e   :  { %v2170_v32 = vmul.f32 %v2898_v31, %v2154_v56 }
0x199f   :  { %v2900_v7 = vpop.eup %2899 }
0x19a0   :  { %v2171_v33 = vmul.f32 %v2900_v7, %v2155_v19  ;;  %v2178_v34 = vmul.f32 %v2461_v8, %v2170_v32 }
0x19a2   :  { %v2179_v35 = vmul.f32 %v2461_v8, %v2171_v33  ;;  %v2186_v2 = vadd.f32 %v2462_v36, %v2178_v34 }
0x19a4   :  { %v2187_v37 = vadd.f32 %v2462_v36, %v2179_v35 }
0x19a6   :  { %v2189_v38 = vrot.slane %v2187_v37, 7 }
0x19a8   :  { %v2192_v39 = vsel %vm2191_vm12, %v2186_v2, %v2189_v38 }
0x19a9   :  { %v2193_v40 = vpack.c.bf16 %v2192_v39, %v2192_v39 }
0x19ab   :  { %2778 = vmatmul.mubr.msk.bf16.vlgmr.msra.gmra.mrb[56].mxu1 %vm328_vm7, %v2193_v40 }
0x19ac   :  { %2785 = vmatprep.mubr.msk.bf16.mxu1 %vm2929_vm0, %v2928_v6  ;;  %2782 = vmatpush3.bf16.msra.mxu1 %v2839_v41 }
0x19ad   :  { %2783 = vmatprep.subr.bf16.mxu1 %v2928_v6  ;;  %v2467_v6 = vld [vmem:[%s3589_s23] ss:$0 sm:$0xff] }
0x19b0   :  { %2784 = vmatpush3.bf16.msra.mxu1 %v2840_v42 }
0x1a7e   :  { %v2254_v15 = vpop.f32.mrb[56].mxu1 }
0x1a7f   :  { %v2255_v44 = vadd.f32 %v2463_v43, %v2254_v15  ;;  %v2779_v45 = vpop.f32.mrb[57].mxu1 }
0x1a80   :  { %v2257_v46 = vpop.f32.mrb[58].mxu1 }
0x1a81   :  { %2901 = vtanh.f32 %v2255_v44  ;;  %v2780_v47 = vpop.f32.mrb[59].mxu1 }
0x1a8b   :  { %v2902_v48 = vpop.eup %2901 }
0x1a8c   :  { %v2261_v49 = vpack.c.bf16 %v2902_v48, %v2902_v48 }
0x1a8e   :  { %2786 = vmatmul.mubr.msk.bf16.vlgmr.msra.gmra.mrb[60].mxu1 %vm328_vm7, %v2261_v49 }
0x1b61   :  { %v2322_v50 = vpop.f32.mrb[60].mxu1 }
0x1b62   :  { %v2323_v51 = vadd.f32 %v2467_v6, %v2322_v50  ;;  %v2787_v52 = vpop.f32.mrb[61].mxu1 }
0x1b63   :  { %v2325_v18 = vpop.f32.mrb[62].mxu1 }
0x1b64   :  { %2328 = vst [vmem:[#allocation2] sm:$0x3] %v2323_v51  ;;  %v2788_v53 = vpop.f32.mrb[63].mxu1 }
0x1b65   :  { %2914 = shalt.err (!%p2911_p4)
}
0x1b66   :  { %s2915_s23 = scalar_lea.hbm %s3590_s24, 32 }
0x1b67   :  { %p2916_p5 = scmp.ne.s32.totalorder %s3590_s24, %s2915_s23  ;;  %p2919_p6 = scmp.lt.u32.totalorder %s2915_s23, %s3590_s24 }
0x1b69   :  { %p2921_p7 = pnand %p2919_p6, %p2916_p5 }
0x1b6b   :  { %2924 = shalt.err (!%p2921_p7)
}
0x1b6c   :  { %2338 = dma.vmem_to_hbm [thread:$0]  %s2336_s27, 32, %s3590_s24, [#allocation3]  }
0x1b6d   :  { %2925 = dma.done.wait [#allocation3], 32  }
0x1b6e   :  { %2926 = vsyncadd [#allocation3], 4294967264 }
0x1b6f   :  { %2342 = vsyncpa [#allocation3], 1 }

</bundles_post_ra>
